<compile_context>
chip_gen: v6e
topology: v6e:2x2x1
jax: 0.10.0
libtpu: 0.0.40
codegen_flags: <defaults>
</compile_context>

<pallas_src>
import math
import numpy as np
import jax
import jax.numpy as jnp
from jax.experimental import pallas as pl
from jax.experimental.pallas import tpu as pltpu


def _round_up(x, m):
    return ((x + m - 1) // m) * m


# ----------------------------------------------------------------------------
# Anchor generation (host-side constant, mirrors RPN.make_anchor_box exactly)
# ----------------------------------------------------------------------------
def make_anchor_box(image_size, grid_size):
    anchor_bbox_area = [128 * 128, 256 * 256, 512 * 512]
    anchor_bbox_ratio = [[1, 1], [2, 1], [1, 2]]
    img_height, img_width = image_size
    grid_height, grid_width = grid_size
    # torch.range(0, W, step)[1::2] == cell centers
    x_range = (2 * np.arange(grid_width) + 1) * (img_width / (grid_width * 2.0))
    y_range = (2 * np.arange(grid_height) + 1) * (img_height / (grid_height * 2.0))
    grid_x, grid_y = np.meshgrid(x_range, y_range, indexing="ij")  # torch default 'ij'
    xy = np.concatenate([grid_x.reshape(-1, 1), grid_y.reshape(-1, 1)], axis=-1)
    xy = xy.reshape(grid_height, grid_width, 2)
    anchor_list = []
    for area in anchor_bbox_area:
        for ratio in anchor_bbox_ratio:
            w_ratio, h_ratio = ratio
            u = math.sqrt(area / (w_ratio * h_ratio))
            w, h = w_ratio * u, h_ratio * u
            wh = np.tile(np.array([w, h]), grid_height * grid_width).reshape(
                grid_height, grid_width, 2)
            xywh = np.concatenate([xy.copy(), wh], axis=-1)[:, :, None, :]
            anchor_list.append(xywh)
    anchor_boxes = np.concatenate(anchor_list, axis=2)  # (gh, gw, 9, 4) : cx,cy,w,h
    anchor_boxes[..., 0] -= anchor_boxes[..., 2] / 2
    anchor_boxes[..., 1] -= anchor_boxes[..., 3] / 2
    anchor_boxes[..., 2:] += anchor_boxes[..., :2]
    return anchor_boxes.astype(np.float32)  # x1,y1,x2,y2


# ----------------------------------------------------------------------------
# Geometry helpers
# ----------------------------------------------------------------------------
def _pick_tile_h(H, W):
    """Largest row-block height dividing H, <=4096 rows, keeping >=2 grid steps
    on the 'parallel' axis so v7x's two TensorCores both get work."""
    best = H
    for th in range(1, H + 1):
        if H % th:
            continue
        rows = th * W
        if rows % 8 != 0 and th != H:
            continue          # output block second-last dim must be 8-aligned
        if rows > 4096:
            continue
        if H // th >= 2:
            best = th
    return best


def _anchor_grid_geometry(H, W):
    """A (true anchor count), G (128-lane groups after padding), decode tile."""
    A = 9 * H * W
    G = -(-A // 128)
    if G <= 32:
        g_tile = G            # single block (review: one block for small A)
    else:
        g_tile = 16           # 2048 anchors per grid step
        G = _round_up(G, 16)
    return A, G, g_tile


# ----------------------------------------------------------------------------
# Kernel A: fused 3x3 trunk conv (in-kernel im2col via shifted reads) + ReLU
#           + fused 1x1 bbox/score heads -> lane-dense (N, 128) bf16 output
#           (cols 0:36 bbox deltas, 36:54 scores, rest zero)
# ----------------------------------------------------------------------------
def _make_heads_kernel(tile_h, W, c_in, c_hid):
    rows = tile_h * W

    def kernel(x_ref, w1_ref, b1_ref, wh_ref, bh_ref, out_ref):
        h0 = pl.multiple_of(pl.program_id(0) * tile_h, tile_h)
        acc = jnp.zeros((rows, c_hid), jnp.float32)
        for kh in range(3):                       # static 3x3 tap loop (unrolled)
            for kw in range(3):
                sl = x_ref[pl.ds(h0 + kh, tile_h), pl.ds(kw, W), :]   # (th, W, c_in)
                lhs = sl.reshape(rows, c_in).astype(jnp.bfloat16)
                acc = acc + jnp.dot(lhs, w1_ref[kh * 3 + kw],
                                    preferred_element_type=jnp.float32)
        hid = jnp.maximum(acc + b1_ref[...], 0.0).astype(jnp.bfloat16)  # trunk + ReLU
        o = jnp.dot(hid, wh_ref[...], preferred_element_type=jnp.float32) + bh_ref[...]
        out_ref[...] = jnp.maximum(o, 0.0).astype(jnp.bfloat16)        # heads' ReLU

    return kernel


def run_heads(xpad, w1, b1, wh, bh, H, W, tile_h):
    hp2, wp2, c_in = xpad.shape
    c_hid = wh.shape[0]
    N = H * W
    return pl.pallas_call(
        _make_heads_kernel(tile_h, W, c_in, c_hid),
        out_shape=jax.ShapeDtypeStruct((N, 128), jnp.bfloat16),
        grid=(H // tile_h,),
        in_specs=[
            # padded input stays resident in VMEM (constant block index)
            pl.BlockSpec((hp2, wp2, c_in), lambda i: (0, 0, 0)),
            pl.BlockSpec((9, c_in, c_hid), lambda i: (0, 0, 0)),
            pl.BlockSpec((1, c_hid), lambda i: (0, 0)),
            pl.BlockSpec((c_hid, 128), lambda i: (0, 0)),
            pl.BlockSpec((1, 128), lambda i: (0, 0)),
        ],
        out_specs=pl.BlockSpec((tile_h * W, 128), lambda i: (i, 0)),
        compiler_params=pltpu.CompilerParams(
            dimension_semantics=("parallel",),          # megacore on v7x
            vmem_limit_bytes=48 * 1024 * 1024),         # < v7x's 64 MiB physical
    )(xpad, w1, b1, wh, bh)


# ----------------------------------------------------------------------------
# Kernel B: box decode + clamp + keep-mask on full-vreg planes.
#   dyn  (6, G, 128): planes 0-3 regression dx,dy,dw,dh ; 4-5 scores
#   anc  (4, G, 128): planes x1,y1,x2,y2
#   out  (8, G, 128): planes 0-3 clamped boxes, 4-5 scores, 6 keep, 7 zero
# ----------------------------------------------------------------------------
def _make_decode_kernel(height, width):
    h_f = float(height)
    w_f = float(width)

    def kernel(dyn_ref, anc_ref, out_ref):
        dx, dy, dw, dh = dyn_ref[0], dyn_ref[1], dyn_ref[2], dyn_ref[3]
        s0, s1 = dyn_ref[4], dyn_ref[5]
        ax1, ay1, ax2, ay2 = anc_ref[0], anc_ref[1], anc_ref[2], anc_ref[3]
        w_a = ax2 - ax1
        h_a = ay2 - ay1
        cx_a = (ax1 + ax2) * 0.5
        cy_a = (ay1 + ay2) * 0.5
        cx = dx * w_a + cx_a
        cy = dy * h_a + cy_a
        w = jnp.exp(dw) * w_a
        h = jnp.exp(dh) * h_a
        # proposal_filter clamping
        x1 = jnp.clip(cx - 0.5 * w, 0.0, w_f)
        y1 = jnp.clip(cy - 0.5 * h, 0.0, h_f)
        x2 = jnp.clip(cx + 0.5 * w, 0.0, w_f)
        y2 = jnp.clip(cy + 0.5 * h, 0.0, h_f)
        area = jnp.abs((x1 - x2) * (y1 - y2))
        keep = jnp.logical_and(s0 > 0.2, area > 100.0).astype(jnp.float32)
        out_ref[0] = x1
        out_ref[1] = y1
        out_ref[2] = x2
        out_ref[3] = y2
        out_ref[4] = s0
        out_ref[5] = s1
        out_ref[6] = keep
        out_ref[7] = jnp.zeros_like(keep)

    return kernel


def run_decode(dyn_packed, anc_packed, img_size, g_tile):
    height, width = img_size
    G = dyn_packed.shape[1]
    spec = lambda planes: pl.BlockSpec((planes, g_tile, 128), lambda i: (0, i, 0))
    return pl.pallas_call(
        _make_decode_kernel(height, width),
        out_shape=jax.ShapeDtypeStruct((8, G, 128), jnp.float32),
        grid=(G // g_tile,),
        in_specs=[spec(6), spec(4)],
        out_specs=spec(8),
        compiler_params=pltpu.CompilerParams(
            dimension_semantics=("parallel",),
            vmem_limit_bytes=48 * 1024 * 1024),
    )(dyn_packed, anc_packed)


# ----------------------------------------------------------------------------
# Parameter setup (done once, outside the forward)
# ----------------------------------------------------------------------------
def init_params(key, in_ch):
    k1, k2, k3 = jax.random.split(key, 3)
    w1 = 0.1 * jax.random.normal(k1, (in_ch, in_ch, 3, 3), jnp.float32)
    b1 = jnp.full((in_ch,), 0.01, jnp.float32)
    wb = 0.1 * jax.random.normal(k2, (36, in_ch, 1, 1), jnp.float32)
    bb = jnp.full((36,), 0.01, jnp.float32)
    ws = 0.1 * jax.random.normal(k3, (18, in_ch, 1, 1), jnp.float32)
    bs = jnp.full((18,), 0.3, jnp.float32)
    return dict(w1=w1, b1=b1, wb=wb, bb=bb, ws=ws, bs=bs)


def pack_params(params, in_ch):
    """Reshape / fuse / pad weights for the fused heads kernel."""
    C = in_ch
    c_in = _round_up(C, 8)      # K of the per-tap matmul (>= one sublane group)
    c_hid = _round_up(C, 128)   # lane-dense hidden width
    # NOTE: on v6e/v7x, padding c_hid to 256 would fill the 256-wide MXU — only
    # worth it when C >= 128 and the kernel becomes compute-bound.
    # trunk weight (out, in, kh, kw) -> (9, c_in, c_hid), tap = kh*3+kw
    w1_t = jnp.transpose(params["w1"], (2, 3, 1, 0)).reshape(9, C, C)
    w1p = jnp.zeros((9, c_in, c_hid), jnp.float32).at[:, :C, :C].set(w1_t)
    b1p = jnp.zeros((1, c_hid), jnp.float32).at[0, :C].set(params["b1"])
    # heads: concat bbox (C,36) + score (C,18) -> zero-pad to (c_hid, 128)
    wbm = params["wb"].reshape(36, C).T
    wsm = params["ws"].reshape(18, C).T
    whp = jnp.zeros((c_hid, 128), jnp.float32).at[:C, :36].set(wbm).at[:C, 36:54].set(wsm)
    bhp = jnp.zeros((1, 128), jnp.float32).at[0, :36].set(params["bb"]).at[0, 36:54].set(params["bs"])
    return dict(w1=w1p.astype(jnp.bfloat16), b1=b1p,
                wh=whp.astype(jnp.bfloat16), bh=bhp)


def build_anchors(img_size, H, W):
    """Anchors as a device-resident constant, pre-packed for the decode kernel."""
    A, G, g_tile = _anchor_grid_geometry(H, W)
    anc = make_anchor_box(img_size, [H, W]).reshape(-1, 4).T      # (4, A) x1,y1,x2,y2
    anc = np.pad(anc, ((0, 0), (0, G * 128 - A)))
    return jnp.asarray(anc.reshape(4, G, 128)), A, G, g_tile


# ----------------------------------------------------------------------------
# Jitted device path: layout prep -> kernel A -> planarize -> kernel B
# ----------------------------------------------------------------------------
def make_rpn_device_fn(img_size):
    height, width = img_size

    @jax.jit
    def device_fn(x, w1, b1, wh, bh, anc_packed):
        B, C, H, W = x.shape
        c_in = w1.shape[1]
        N = H * W
        A, G, g_tile = _anchor_grid_geometry(H, W)
        A_pad = G * 128
        tile_h = _pick_tile_h(H, W)

        # NCHW (batch=1) -> zero-padded NHWC, channels padded to c_in
        xh = jnp.transpose(x[0], (1, 2, 0))                       # (H, W, C)
        xh = jnp.pad(xh, ((1, 1), (1, 1), (0, c_in - C)))         # (H+2, W+2, c_in)

        out = run_heads(xh, w1, b1, wh, bh, H, W, tile_h)         # (N, 128) bf16

        # Reproduce the exact PyTorch NCHW .view(-1,4)/.view(-1,2) grouping,
        # coordinate-planar for the decode kernel (single fused XLA transpose).
        reg = (out[:, :36].reshape(H, W // 4, 4, 36)
               .transpose(2, 3, 0, 1).reshape(4, A).astype(jnp.float32))
        sc = (out[:, 36:54].reshape(H, W // 2, 2, 18)
              .transpose(2, 3, 0, 1).reshape(2, A).astype(jnp.float32))
        dyn = jnp.concatenate([reg, sc], axis=0)                  # (6, A)
        dyn = jnp.pad(dyn, ((0, 0), (0, A_pad - A))).reshape(6, G, 128)

        return run_decode(dyn, anc_packed, (height, width), g_tile)   # (8, G, 128)

    return device_fn


def rpn_forward(x, img_size, packed_params, anc_packed, device_fn):
    B, C, H, W = x.shape
    assert B == 1, "reference box_decoder broadcasting only supports batch=1"
    assert W % 4 == 0, "reference .view(-1,4) grouping needs W % 4 == 0"
    A = 9 * H * W

    packed = device_fn(x, packed_params["w1"], packed_params["b1"],
                       packed_params["wh"], packed_params["bh"], anc_packed)

    # proposal_filter tail: topk(200000) never triggers at these sizes.
    # Single device->host transfer; boolean compaction is data-dependent shape.
    packed_np = np.asarray(packed).reshape(8, -1)[:, :A]          # one transfer
    keep = packed_np[6] > 0.5
    boxes_np = packed_np[0:4][:, keep].T                          # (K, 4)
    scores_np = packed_np[4:6][:, keep].T                         # (K, 2)
    # TODO(synk): torchvision.ops.nms(iou=0.7)[:2000] has no clean Pallas equivalent.
    loss = None
    return jnp.asarray(boxes_np), jnp.asarray(scores_np), loss


if __name__ == "__main__":
    in_ch = 4
    key = jax.random.PRNGKey(0)
    kx, kp_ = jax.random.split(key)
    x = jax.random.normal(kx, (1, in_ch, 16, 16), jnp.float32)    # NCHW, batch=1
    params = init_params(kp_, in_ch)
    packed_params = pack_params(params, in_ch)
    img_size = (512, 512)                                         # (height, width)

    H, W = x.shape[2], x.shape[3]
    anc_packed, _, _, _ = build_anchors(img_size, H, W)           # hoisted constant
    device_fn = make_rpn_device_fn(img_size)                      # single jit

    bbox, objectness_bbox, loss = rpn_forward(
        x, img_size, packed_params, anc_packed, device_fn)
    jax.block_until_ready(bbox)
    jax.block_until_ready(objectness_bbox)
    print("KERNEL_OK")
</pallas_src>

<mosaic_0001>
module attributes {stable_mosaic.version = 11 : i64} {
  func.func @kernel(%arg0: i32, %arg1: memref<18x18x8xf32, #tpu.memory_space<vmem>>, %arg2: memref<9x8x128xbf16, #tpu.memory_space<vmem>>, %arg3: memref<1x128xf32, #tpu.memory_space<vmem>>, %arg4: memref<128x128xbf16, #tpu.memory_space<vmem>>, %arg5: memref<1x128xf32, #tpu.memory_space<vmem>>, %arg6: memref<128x128xbf16, #tpu.memory_space<vmem>>) attributes {dimension_semantics = [#tpu.dimension_semantics<parallel>], iteration_bounds = array<i64: 2>, scalar_prefetch = 0 : i64, scratch_operands = 0 : i64, tpu.core_type = #tpu.core_type<tc>, window_params = [{pipeline_mode = #tpu.pipeline_mode<synchronous>, transform_indices = @transform_0, window_bounds = array<i64: 18, 18, 8>}, {pipeline_mode = #tpu.pipeline_mode<synchronous>, transform_indices = @transform_1, window_bounds = array<i64: 9, 8, 128>}, {pipeline_mode = #tpu.pipeline_mode<synchronous>, transform_indices = @transform_2, window_bounds = array<i64: 1, 128>}, {pipeline_mode = #tpu.pipeline_mode<synchronous>, transform_indices = @transform_3, window_bounds = array<i64: 128, 128>}, {pipeline_mode = #tpu.pipeline_mode<synchronous>, transform_indices = @transform_4, window_bounds = array<i64: 1, 128>}, {transform_indices = @transform_5, window_bounds = array<i64: 128, 128>}]} {
    %c8_i32 = arith.constant 8 : i32
    %0 = arith.muli %arg0, %c8_i32 : i32
    %1 = tpu.assume_multiple %0, 8 : i32
    %cst = arith.constant 0.000000e+00 : f32
    %2 = vector.broadcast %cst : f32 to vector<128x128xf32>
    %c0_i32 = arith.constant 0 : i32
    %3 = arith.addi %1, %c0_i32 : i32
    %4 = arith.index_cast %3 : i32 to index
    %c0 = arith.constant 0 : index
    %c0_0 = arith.constant 0 : index
    %5 = vector.load %arg1[%4, %c0, %c0_0] : memref<18x18x8xf32, #tpu.memory_space<vmem>>, vector<8x16x8xf32>
    %6 = vector.shape_cast %5 : vector<8x16x8xf32> to vector<128x8xf32>
    %7 = arith.truncf %6 : vector<128x8xf32> to vector<128x8xbf16>
    %c0_1 = arith.constant 0 : index
    %c0_2 = arith.constant 0 : index
    %c0_3 = arith.constant 0 : index
    %8 = vector.load %arg2[%c0_1, %c0_2, %c0_3] : memref<9x8x128xbf16, #tpu.memory_space<vmem>>, vector<1x8x128xbf16>
    %9 = vector.shape_cast %8 : vector<1x8x128xbf16> to vector<8x128xbf16>
    %cst_4 = arith.constant dense<0.000000e+00> : vector<128x128xf32>
    %10 = tpu.matmul %7, %9, %cst_4 {dimension_numbers = #tpu.dot_dimension_numbers<[1], [0], [0], [1], [0, 0, 1, 1], [], []>} : vector<128x8xbf16>, vector<8x128xbf16>, vector<128x128xf32> -> vector<128x128xf32>
    %11 = arith.addf %2, %10 : vector<128x128xf32>
    %c0_i32_5 = arith.constant 0 : i32
    %12 = arith.addi %1, %c0_i32_5 : i32
    %13 = arith.index_cast %12 : i32 to index
    %c1 = arith.constant 1 : index
    %c0_6 = arith.constant 0 : index
    %14 = vector.load %arg1[%13, %c1, %c0_6] : memref<18x18x8xf32, #tpu.memory_space<vmem>>, vector<8x16x8xf32>
    %15 = vector.shape_cast %14 : vector<8x16x8xf32> to vector<128x8xf32>
    %16 = arith.truncf %15 : vector<128x8xf32> to vector<128x8xbf16>
    %c1_7 = arith.constant 1 : index
    %c0_8 = arith.constant 0 : index
    %c0_9 = arith.constant 0 : index
    %17 = vector.load %arg2[%c1_7, %c0_8, %c0_9] : memref<9x8x128xbf16, #tpu.memory_space<vmem>>, vector<1x8x128xbf16>
    %18 = vector.shape_cast %17 : vector<1x8x128xbf16> to vector<8x128xbf16>
    %cst_10 = arith.constant dense<0.000000e+00> : vector<128x128xf32>
    %19 = tpu.matmul %16, %18, %cst_10 {dimension_numbers = #tpu.dot_dimension_numbers<[1], [0], [0], [1], [0, 0, 1, 1], [], []>} : vector<128x8xbf16>, vector<8x128xbf16>, vector<128x128xf32> -> vector<128x128xf32>
    %20 = arith.addf %11, %19 : vector<128x128xf32>
    %c0_i32_11 = arith.constant 0 : i32
    %21 = arith.addi %1, %c0_i32_11 : i32
    %22 = arith.index_cast %21 : i32 to index
    %c2 = arith.constant 2 : index
    %c0_12 = arith.constant 0 : index
    %23 = vector.load %arg1[%22, %c2, %c0_12] : memref<18x18x8xf32, #tpu.memory_space<vmem>>, vector<8x16x8xf32>
    %24 = vector.shape_cast %23 : vector<8x16x8xf32> to vector<128x8xf32>
    %25 = arith.truncf %24 : vector<128x8xf32> to vector<128x8xbf16>
    %c2_13 = arith.constant 2 : index
    %c0_14 = arith.constant 0 : index
    %c0_15 = arith.constant 0 : index
    %26 = vector.load %arg2[%c2_13, %c0_14, %c0_15] : memref<9x8x128xbf16, #tpu.memory_space<vmem>>, vector<1x8x128xbf16>
    %27 = vector.shape_cast %26 : vector<1x8x128xbf16> to vector<8x128xbf16>
    %cst_16 = arith.constant dense<0.000000e+00> : vector<128x128xf32>
    %28 = tpu.matmul %25, %27, %cst_16 {dimension_numbers = #tpu.dot_dimension_numbers<[1], [0], [0], [1], [0, 0, 1, 1], [], []>} : vector<128x8xbf16>, vector<8x128xbf16>, vector<128x128xf32> -> vector<128x128xf32>
    %29 = arith.addf %20, %28 : vector<128x128xf32>
    %c1_i32 = arith.constant 1 : i32
    %30 = arith.addi %1, %c1_i32 : i32
    %31 = arith.index_cast %30 : i32 to index
    %c0_17 = arith.constant 0 : index
    %c0_18 = arith.constant 0 : index
    %32 = vector.load %arg1[%31, %c0_17, %c0_18] : memref<18x18x8xf32, #tpu.memory_space<vmem>>, vector<8x16x8xf32>
    %33 = vector.shape_cast %32 : vector<8x16x8xf32> to vector<128x8xf32>
    %34 = arith.truncf %33 : vector<128x8xf32> to vector<128x8xbf16>
    %c3 = arith.constant 3 : index
    %c0_19 = arith.constant 0 : index
    %c0_20 = arith.constant 0 : index
    %35 = vector.load %arg2[%c3, %c0_19, %c0_20] : memref<9x8x128xbf16, #tpu.memory_space<vmem>>, vector<1x8x128xbf16>
    %36 = vector.shape_cast %35 : vector<1x8x128xbf16> to vector<8x128xbf16>
    %cst_21 = arith.constant dense<0.000000e+00> : vector<128x128xf32>
    %37 = tpu.matmul %34, %36, %cst_21 {dimension_numbers = #tpu.dot_dimension_numbers<[1], [0], [0], [1], [0, 0, 1, 1], [], []>} : vector<128x8xbf16>, vector<8x128xbf16>, vector<128x128xf32> -> vector<128x128xf32>
    %38 = arith.addf %29, %37 : vector<128x128xf32>
    %c1_i32_22 = arith.constant 1 : i32
    %39 = arith.addi %1, %c1_i32_22 : i32
    %40 = arith.index_cast %39 : i32 to index
    %c1_23 = arith.constant 1 : index
    %c0_24 = arith.constant 0 : index
    %41 = vector.load %arg1[%40, %c1_23, %c0_24] : memref<18x18x8xf32, #tpu.memory_space<vmem>>, vector<8x16x8xf32>
    %42 = vector.shape_cast %41 : vector<8x16x8xf32> to vector<128x8xf32>
    %43 = arith.truncf %42 : vector<128x8xf32> to vector<128x8xbf16>
    %c4 = arith.constant 4 : index
    %c0_25 = arith.constant 0 : index
    %c0_26 = arith.constant 0 : index
    %44 = vector.load %arg2[%c4, %c0_25, %c0_26] : memref<9x8x128xbf16, #tpu.memory_space<vmem>>, vector<1x8x128xbf16>
    %45 = vector.shape_cast %44 : vector<1x8x128xbf16> to vector<8x128xbf16>
    %cst_27 = arith.constant dense<0.000000e+00> : vector<128x128xf32>
    %46 = tpu.matmul %43, %45, %cst_27 {dimension_numbers = #tpu.dot_dimension_numbers<[1], [0], [0], [1], [0, 0, 1, 1], [], []>} : vector<128x8xbf16>, vector<8x128xbf16>, vector<128x128xf32> -> vector<128x128xf32>
    %47 = arith.addf %38, %46 : vector<128x128xf32>
    %c1_i32_28 = arith.constant 1 : i32
    %48 = arith.addi %1, %c1_i32_28 : i32
    %49 = arith.index_cast %48 : i32 to index
    %c2_29 = arith.constant 2 : index
    %c0_30 = arith.constant 0 : index
    %50 = vector.load %arg1[%49, %c2_29, %c0_30] : memref<18x18x8xf32, #tpu.memory_space<vmem>>, vector<8x16x8xf32>
    %51 = vector.shape_cast %50 : vector<8x16x8xf32> to vector<128x8xf32>
    %52 = arith.truncf %51 : vector<128x8xf32> to vector<128x8xbf16>
    %c5 = arith.constant 5 : index
    %c0_31 = arith.constant 0 : index
    %c0_32 = arith.constant 0 : index
    %53 = vector.load %arg2[%c5, %c0_31, %c0_32] : memref<9x8x128xbf16, #tpu.memory_space<vmem>>, vector<1x8x128xbf16>
    %54 = vector.shape_cast %53 : vector<1x8x128xbf16> to vector<8x128xbf16>
    %cst_33 = arith.constant dense<0.000000e+00> : vector<128x128xf32>
    %55 = tpu.matmul %52, %54, %cst_33 {dimension_numbers = #tpu.dot_dimension_numbers<[1], [0], [0], [1], [0, 0, 1, 1], [], []>} : vector<128x8xbf16>, vector<8x128xbf16>, vector<128x128xf32> -> vector<128x128xf32>
    %56 = arith.addf %47, %55 : vector<128x128xf32>
    %c2_i32 = arith.constant 2 : i32
    %57 = arith.addi %1, %c2_i32 : i32
    %58 = arith.index_cast %57 : i32 to index
    %c0_34 = arith.constant 0 : index
    %c0_35 = arith.constant 0 : index
    %59 = vector.load %arg1[%58, %c0_34, %c0_35] : memref<18x18x8xf32, #tpu.memory_space<vmem>>, vector<8x16x8xf32>
    %60 = vector.shape_cast %59 : vector<8x16x8xf32> to vector<128x8xf32>
    %61 = arith.truncf %60 : vector<128x8xf32> to vector<128x8xbf16>
    %c6 = arith.constant 6 : index
    %c0_36 = arith.constant 0 : index
    %c0_37 = arith.constant 0 : index
    %62 = vector.load %arg2[%c6, %c0_36, %c0_37] : memref<9x8x128xbf16, #tpu.memory_space<vmem>>, vector<1x8x128xbf16>
    %63 = vector.shape_cast %62 : vector<1x8x128xbf16> to vector<8x128xbf16>
    %cst_38 = arith.constant dense<0.000000e+00> : vector<128x128xf32>
    %64 = tpu.matmul %61, %63, %cst_38 {dimension_numbers = #tpu.dot_dimension_numbers<[1], [0], [0], [1], [0, 0, 1, 1], [], []>} : vector<128x8xbf16>, vector<8x128xbf16>, vector<128x128xf32> -> vector<128x128xf32>
    %65 = arith.addf %56, %64 : vector<128x128xf32>
    %c2_i32_39 = arith.constant 2 : i32
    %66 = arith.addi %1, %c2_i32_39 : i32
    %67 = arith.index_cast %66 : i32 to index
    %c1_40 = arith.constant 1 : index
    %c0_41 = arith.constant 0 : index
    %68 = vector.load %arg1[%67, %c1_40, %c0_41] : memref<18x18x8xf32, #tpu.memory_space<vmem>>, vector<8x16x8xf32>
    %69 = vector.shape_cast %68 : vector<8x16x8xf32> to vector<128x8xf32>
    %70 = arith.truncf %69 : vector<128x8xf32> to vector<128x8xbf16>
    %c7 = arith.constant 7 : index
    %c0_42 = arith.constant 0 : index
    %c0_43 = arith.constant 0 : index
    %71 = vector.load %arg2[%c7, %c0_42, %c0_43] : memref<9x8x128xbf16, #tpu.memory_space<vmem>>, vector<1x8x128xbf16>
    %72 = vector.shape_cast %71 : vector<1x8x128xbf16> to vector<8x128xbf16>
    %cst_44 = arith.constant dense<0.000000e+00> : vector<128x128xf32>
    %73 = tpu.matmul %70, %72, %cst_44 {dimension_numbers = #tpu.dot_dimension_numbers<[1], [0], [0], [1], [0, 0, 1, 1], [], []>} : vector<128x8xbf16>, vector<8x128xbf16>, vector<128x128xf32> -> vector<128x128xf32>
    %74 = arith.addf %65, %73 : vector<128x128xf32>
    %c2_i32_45 = arith.constant 2 : i32
    %75 = arith.addi %1, %c2_i32_45 : i32
    %76 = arith.index_cast %75 : i32 to index
    %c2_46 = arith.constant 2 : index
    %c0_47 = arith.constant 0 : index
    %77 = vector.load %arg1[%76, %c2_46, %c0_47] : memref<18x18x8xf32, #tpu.memory_space<vmem>>, vector<8x16x8xf32>
    %78 = vector.shape_cast %77 : vector<8x16x8xf32> to vector<128x8xf32>
    %79 = arith.truncf %78 : vector<128x8xf32> to vector<128x8xbf16>
    %c8 = arith.constant 8 : index
    %c0_48 = arith.constant 0 : index
    %c0_49 = arith.constant 0 : index
    %80 = vector.load %arg2[%c8, %c0_48, %c0_49] : memref<9x8x128xbf16, #tpu.memory_space<vmem>>, vector<1x8x128xbf16>
    %81 = vector.shape_cast %80 : vector<1x8x128xbf16> to vector<8x128xbf16>
    %cst_50 = arith.constant dense<0.000000e+00> : vector<128x128xf32>
    %82 = tpu.matmul %79, %81, %cst_50 {dimension_numbers = #tpu.dot_dimension_numbers<[1], [0], [0], [1], [0, 0, 1, 1], [], []>} : vector<128x8xbf16>, vector<8x128xbf16>, vector<128x128xf32> -> vector<128x128xf32>
    %83 = arith.addf %74, %82 : vector<128x128xf32>
    %c0_51 = arith.constant 0 : index
    %c0_52 = arith.constant 0 : index
    %84 = vector.load %arg3[%c0_51, %c0_52] : memref<1x128xf32, #tpu.memory_space<vmem>>, vector<1x128xf32>
    %85 = vector.broadcast %84 : vector<1x128xf32> to vector<128x128xf32>
    %86 = arith.addf %83, %85 : vector<128x128xf32>
    %cst_53 = arith.constant 0.000000e+00 : f32
    %87 = vector.broadcast %cst_53 : f32 to vector<128x128xf32>
    %88 = arith.maximumf %86, %87 : vector<128x128xf32>
    %89 = arith.truncf %88 : vector<128x128xf32> to vector<128x128xbf16>
    %c0_54 = arith.constant 0 : index
    %c0_55 = arith.constant 0 : index
    %90 = vector.load %arg4[%c0_54, %c0_55] : memref<128x128xbf16, #tpu.memory_space<vmem>>, vector<128x128xbf16>
    %cst_56 = arith.constant dense<0.000000e+00> : vector<128x128xf32>
    %91 = tpu.matmul %89, %90, %cst_56 {dimension_numbers = #tpu.dot_dimension_numbers<[1], [0], [0], [1], [0, 0, 1, 1], [], []>} : vector<128x128xbf16>, vector<128x128xbf16>, vector<128x128xf32> -> vector<128x128xf32>
    %c0_57 = arith.constant 0 : index
    %c0_58 = arith.constant 0 : index
    %92 = vector.load %arg5[%c0_57, %c0_58] : memref<1x128xf32, #tpu.memory_space<vmem>>, vector<1x128xf32>
    %93 = vector.broadcast %92 : vector<1x128xf32> to vector<128x128xf32>
    %94 = arith.addf %91, %93 : vector<128x128xf32>
    %cst_59 = arith.constant 0.000000e+00 : f32
    %95 = vector.broadcast %cst_59 : f32 to vector<128x128xf32>
    %96 = arith.maximumf %94, %95 : vector<128x128xf32>
    %97 = arith.truncf %96 : vector<128x128xf32> to vector<128x128xbf16>
    %c0_60 = arith.constant 0 : index
    %c0_61 = arith.constant 0 : index
    %98 = vector.load %arg6[%c0_60, %c0_61] : memref<128x128xbf16, #tpu.memory_space<vmem>>, vector<128x128xbf16>
    tpu.vector_store %arg6[%c0_60, %c0_61], %97 {strides = array<i32>} : memref<128x128xbf16, #tpu.memory_space<vmem>>, vector<128x128xbf16>,
    return
  }
  func.func @transform_0(%arg0: i32) -> (i32, i32, i32) {
    %c0_i32 = arith.constant 0 : i32
    %c0_i32_0 = arith.constant 0 : i32
    %c0_i32_1 = arith.constant 0 : i32
    %c0_i32_2 = arith.constant 0 : i32
    return %c0_i32, %c0_i32_0, %c0_i32_1 : i32, i32, i32
  }
  func.func @transform_1(%arg0: i32) -> (i32, i32, i32) {
    %c0_i32 = arith.constant 0 : i32
    %c0_i32_0 = arith.constant 0 : i32
    %c0_i32_1 = arith.constant 0 : i32
    %c0_i32_2 = arith.constant 0 : i32
    return %c0_i32, %c0_i32_0, %c0_i32_1 : i32, i32, i32
  }
  func.func @transform_2(%arg0: i32) -> (i32, i32) {
    %c0_i32 = arith.constant 0 : i32
    %c0_i32_0 = arith.constant 0 : i32
    %c0_i32_1 = arith.constant 0 : i32
    return %c0_i32, %c0_i32_0 : i32, i32
  }
  func.func @transform_3(%arg0: i32) -> (i32, i32) {
    %c0_i32 = arith.constant 0 : i32
    %c0_i32_0 = arith.constant 0 : i32
    %c0_i32_1 = arith.constant 0 : i32
    return %c0_i32, %c0_i32_0 : i32, i32
  }
  func.func @transform_4(%arg0: i32) -> (i32, i32) {
    %c0_i32 = arith.constant 0 : i32
    %c0_i32_0 = arith.constant 0 : i32
    %c0_i32_1 = arith.constant 0 : i32
    return %c0_i32, %c0_i32_0 : i32, i32
  }
  func.func @transform_5(%arg0: i32) -> (i32, i32) {
    %c0_i32 = arith.constant 0 : i32
    %c0_i32_0 = arith.constant 0 : i32
    return %arg0, %c0_i32 : i32, i32
  }
}

module attributes {stable_mosaic.version = 11 : i64} {
  func.func @kernel(%arg0: i32, %arg1: memref<6x18x128xf32, #tpu.memory_space<vmem>>, %arg2: memref<4x18x128xf32, #tpu.memory_space<vmem>>, %arg3: memref<8x18x128xf32, #tpu.memory_space<vmem>>) attributes {dimension_semantics = [#tpu.dimension_semantics<parallel>], iteration_bounds = array<i64: 1>, scalar_prefetch = 0 : i64, scratch_operands = 0 : i64, tpu.core_type = #tpu.core_type<tc>, window_params = [{transform_indices = @transform_0, window_bounds = array<i64: 6, 18, 128>}, {transform_indices = @transform_1, window_bounds = array<i64: 4, 18, 128>}, {transform_indices = @transform_2, window_bounds = array<i64: 8, 18, 128>}]} {
    %c0 = arith.constant 0 : index
    %c0_0 = arith.constant 0 : index
    %c0_1 = arith.constant 0 : index
    %0 = vector.load %arg1[%c0, %c0_0, %c0_1] : memref<6x18x128xf32, #tpu.memory_space<vmem>>, vector<1x18x128xf32>
    %1 = vector.shape_cast %0 : vector<1x18x128xf32> to vector<18x128xf32>
    %c1 = arith.constant 1 : index
    %c0_2 = arith.constant 0 : index
    %c0_3 = arith.constant 0 : index
    %2 = vector.load %arg1[%c1, %c0_2, %c0_3] : memref<6x18x128xf32, #tpu.memory_space<vmem>>, vector<1x18x128xf32>
    %3 = vector.shape_cast %2 : vector<1x18x128xf32> to vector<18x128xf32>
    %c2 = arith.constant 2 : index
    %c0_4 = arith.constant 0 : index
    %c0_5 = arith.constant 0 : index
    %4 = vector.load %arg1[%c2, %c0_4, %c0_5] : memref<6x18x128xf32, #tpu.memory_space<vmem>>, vector<1x18x128xf32>
    %5 = vector.shape_cast %4 : vector<1x18x128xf32> to vector<18x128xf32>
    %c3 = arith.constant 3 : index
    %c0_6 = arith.constant 0 : index
    %c0_7 = arith.constant 0 : index
    %6 = vector.load %arg1[%c3, %c0_6, %c0_7] : memref<6x18x128xf32, #tpu.memory_space<vmem>>, vector<1x18x128xf32>
    %7 = vector.shape_cast %6 : vector<1x18x128xf32> to vector<18x128xf32>
    %c4 = arith.constant 4 : index
    %c0_8 = arith.constant 0 : index
    %c0_9 = arith.constant 0 : index
    %8 = vector.load %arg1[%c4, %c0_8, %c0_9] : memref<6x18x128xf32, #tpu.memory_space<vmem>>, vector<1x18x128xf32>
    %9 = vector.shape_cast %8 : vector<1x18x128xf32> to vector<18x128xf32>
    %c5 = arith.constant 5 : index
    %c0_10 = arith.constant 0 : index
    %c0_11 = arith.constant 0 : index
    %10 = vector.load %arg1[%c5, %c0_10, %c0_11] : memref<6x18x128xf32, #tpu.memory_space<vmem>>, vector<1x18x128xf32>
    %11 = vector.shape_cast %10 : vector<1x18x128xf32> to vector<18x128xf32>
    %c0_12 = arith.constant 0 : index
    %c0_13 = arith.constant 0 : index
    %c0_14 = arith.constant 0 : index
    %12 = vector.load %arg2[%c0_12, %c0_13, %c0_14] : memref<4x18x128xf32, #tpu.memory_space<vmem>>, vector<1x18x128xf32>
    %13 = vector.shape_cast %12 : vector<1x18x128xf32> to vector<18x128xf32>
    %c1_15 = arith.constant 1 : index
    %c0_16 = arith.constant 0 : index
    %c0_17 = arith.constant 0 : index
    %14 = vector.load %arg2[%c1_15, %c0_16, %c0_17] : memref<4x18x128xf32, #tpu.memory_space<vmem>>, vector<1x18x128xf32>
    %15 = vector.shape_cast %14 : vector<1x18x128xf32> to vector<18x128xf32>
    %c2_18 = arith.constant 2 : index
    %c0_19 = arith.constant 0 : index
    %c0_20 = arith.constant 0 : index
    %16 = vector.load %arg2[%c2_18, %c0_19, %c0_20] : memref<4x18x128xf32, #tpu.memory_space<vmem>>, vector<1x18x128xf32>
    %17 = vector.shape_cast %16 : vector<1x18x128xf32> to vector<18x128xf32>
    %c3_21 = arith.constant 3 : index
    %c0_22 = arith.constant 0 : index
    %c0_23 = arith.constant 0 : index
    %18 = vector.load %arg2[%c3_21, %c0_22, %c0_23] : memref<4x18x128xf32, #tpu.memory_space<vmem>>, vector<1x18x128xf32>
    %19 = vector.shape_cast %18 : vector<1x18x128xf32> to vector<18x128xf32>
    %20 = arith.subf %17, %13 : vector<18x128xf32>
    %21 = arith.subf %19, %15 : vector<18x128xf32>
    %22 = arith.addf %13, %17 : vector<18x128xf32>
    %cst = arith.constant 5.000000e-01 : f32
    %23 = vector.broadcast %cst : f32 to vector<18x128xf32>
    %24 = arith.mulf %22, %23 : vector<18x128xf32>
    %25 = arith.addf %15, %19 : vector<18x128xf32>
    %cst_24 = arith.constant 5.000000e-01 : f32
    %26 = vector.broadcast %cst_24 : f32 to vector<18x128xf32>
    %27 = arith.mulf %25, %26 : vector<18x128xf32>
    %28 = arith.mulf %1, %20 : vector<18x128xf32>
    %29 = arith.addf %28, %24 : vector<18x128xf32>
    %30 = arith.mulf %3, %21 : vector<18x128xf32>
    %31 = arith.addf %30, %27 : vector<18x128xf32>
    %32 = math.exp %5 : vector<18x128xf32>
    %33 = arith.mulf %32, %20 : vector<18x128xf32>
    %34 = math.exp %7 : vector<18x128xf32>
    %35 = arith.mulf %34, %21 : vector<18x128xf32>
    %cst_25 = arith.constant 5.000000e-01 : f32
    %36 = vector.broadcast %cst_25 : f32 to vector<18x128xf32>
    %37 = arith.mulf %36, %33 : vector<18x128xf32>
    %38 = arith.subf %29, %37 : vector<18x128xf32>
    %cst_26 = arith.constant 0.000000e+00 : f32
    %cst_27 = arith.constant 5.120000e+02 : f32
    %39 = vector.broadcast %cst_26 : f32 to vector<18x128xf32>
    %40 = arith.maximumf %39, %38 : vector<18x128xf32>
    %41 = vector.broadcast %cst_27 : f32 to vector<18x128xf32>
    %42 = arith.minimumf %41, %40 : vector<18x128xf32>
    %cst_28 = arith.constant 5.000000e-01 : f32
    %43 = vector.broadcast %cst_28 : f32 to vector<18x128xf32>
    %44 = arith.mulf %43, %35 : vector<18x128xf32>
    %45 = arith.subf %31, %44 : vector<18x128xf32>
    %cst_29 = arith.constant 0.000000e+00 : f32
    %cst_30 = arith.constant 5.120000e+02 : f32
    %46 = vector.broadcast %cst_29 : f32 to vector<18x128xf32>
    %47 = arith.maximumf %46, %45 : vector<18x128xf32>
    %48 = vector.broadcast %cst_30 : f32 to vector<18x128xf32>
    %49 = arith.minimumf %48, %47 : vector<18x128xf32>
    %cst_31 = arith.constant 5.000000e-01 : f32
    %50 = vector.broadcast %cst_31 : f32 to vector<18x128xf32>
    %51 = arith.mulf %50, %33 : vector<18x128xf32>
    %52 = arith.addf %29, %51 : vector<18x128xf32>
    %cst_32 = arith.constant 0.000000e+00 : f32
    %cst_33 = arith.constant 5.120000e+02 : f32
    %53 = vector.broadcast %cst_32 : f32 to vector<18x128xf32>
    %54 = arith.maximumf %53, %52 : vector<18x128xf32>
    %55 = vector.broadcast %cst_33 : f32 to vector<18x128xf32>
    %56 = arith.minimumf %55, %54 : vector<18x128xf32>
    %cst_34 = arith.constant 5.000000e-01 : f32
    %57 = vector.broadcast %cst_34 : f32 to vector<18x128xf32>
    %58 = arith.mulf %57, %35 : vector<18x128xf32>
    %59 = arith.addf %31, %58 : vector<18x128xf32>
    %cst_35 = arith.constant 0.000000e+00 : f32
    %cst_36 = arith.constant 5.120000e+02 : f32
    %60 = vector.broadcast %cst_35 : f32 to vector<18x128xf32>
    %61 = arith.maximumf %60, %59 : vector<18x128xf32>
    %62 = vector.broadcast %cst_36 : f32 to vector<18x128xf32>
    %63 = arith.minimumf %62, %61 : vector<18x128xf32>
    %64 = arith.subf %42, %56 : vector<18x128xf32>
    %65 = arith.subf %49, %63 : vector<18x128xf32>
    %66 = arith.mulf %64, %65 : vector<18x128xf32>
    %67 = math.absf %66 : vector<18x128xf32>
    %cst_37 = arith.constant 2.000000e-01 : f32
    %68 = vector.broadcast %cst_37 : f32 to vector<18x128xf32>
    %69 = arith.cmpf ogt, %9, %68 : vector<18x128xf32>
    %cst_38 = arith.constant 1.000000e+02 : f32
    %70 = vector.broadcast %cst_38 : f32 to vector<18x128xf32>
    %71 = arith.cmpf ogt, %67, %70 : vector<18x128xf32>
    %72 = arith.andi %69, %71 : vector<18x128xi1>
    %73 = arith.extui %72 : vector<18x128xi1> to vector<18x128xi32>
    %74 = arith.sitofp %73 : vector<18x128xi32> to vector<18x128xf32>
    %c0_39 = arith.constant 0 : index
    %c0_40 = arith.constant 0 : index
    %c0_41 = arith.constant 0 : index
    %75 = vector.load %arg3[%c0_39, %c0_40, %c0_41] : memref<8x18x128xf32, #tpu.memory_space<vmem>>, vector<1x18x128xf32>
    %76 = vector.shape_cast %75 : vector<1x18x128xf32> to vector<18x128xf32>
    %77 = vector.shape_cast %42 : vector<18x128xf32> to vector<1x18x128xf32>
    tpu.vector_store %arg3[%c0_39, %c0_40, %c0_41], %77 {strides = array<i32>} : memref<8x18x128xf32, #tpu.memory_space<vmem>>, vector<1x18x128xf32>,
    %c1_42 = arith.constant 1 : index
    %c0_43 = arith.constant 0 : index
    %c0_44 = arith.constant 0 : index
    %78 = vector.load %arg3[%c1_42, %c0_43, %c0_44] : memref<8x18x128xf32, #tpu.memory_space<vmem>>, vector<1x18x128xf32>
    %79 = vector.shape_cast %78 : vector<1x18x128xf32> to vector<18x128xf32>
    %80 = vector.shape_cast %49 : vector<18x128xf32> to vector<1x18x128xf32>
    tpu.vector_store %arg3[%c1_42, %c0_43, %c0_44], %80 {strides = array<i32>} : memref<8x18x128xf32, #tpu.memory_space<vmem>>, vector<1x18x128xf32>,
    %c2_45 = arith.constant 2 : index
    %c0_46 = arith.constant 0 : index
    %c0_47 = arith.constant 0 : index
    %81 = vector.load %arg3[%c2_45, %c0_46, %c0_47] : memref<8x18x128xf32, #tpu.memory_space<vmem>>, vector<1x18x128xf32>
    %82 = vector.shape_cast %81 : vector<1x18x128xf32> to vector<18x128xf32>
    %83 = vector.shape_cast %56 : vector<18x128xf32> to vector<1x18x128xf32>
    tpu.vector_store %arg3[%c2_45, %c0_46, %c0_47], %83 {strides = array<i32>} : memref<8x18x128xf32, #tpu.memory_space<vmem>>, vector<1x18x128xf32>,
    %c3_48 = arith.constant 3 : index
    %c0_49 = arith.constant 0 : index
    %c0_50 = arith.constant 0 : index
    %84 = vector.load %arg3[%c3_48, %c0_49, %c0_50] : memref<8x18x128xf32, #tpu.memory_space<vmem>>, vector<1x18x128xf32>
    %85 = vector.shape_cast %84 : vector<1x18x128xf32> to vector<18x128xf32>
    %86 = vector.shape_cast %63 : vector<18x128xf32> to vector<1x18x128xf32>
    tpu.vector_store %arg3[%c3_48, %c0_49, %c0_50], %86 {strides = array<i32>} : memref<8x18x128xf32, #tpu.memory_space<vmem>>, vector<1x18x128xf32>,
    %c4_51 = arith.constant 4 : index
    %c0_52 = arith.constant 0 : index
    %c0_53 = arith.constant 0 : index
    %87 = vector.load %arg3[%c4_51, %c0_52, %c0_53] : memref<8x18x128xf32, #tpu.memory_space<vmem>>, vector<1x18x128xf32>
    %88 = vector.shape_cast %87 : vector<1x18x128xf32> to vector<18x128xf32>
    %89 = vector.shape_cast %9 : vector<18x128xf32> to vector<1x18x128xf32>
    tpu.vector_store %arg3[%c4_51, %c0_52, %c0_53], %89 {strides = array<i32>} : memref<8x18x128xf32, #tpu.memory_space<vmem>>, vector<1x18x128xf32>,
    %c5_54 = arith.constant 5 : index
    %c0_55 = arith.constant 0 : index
    %c0_56 = arith.constant 0 : index
    %90 = vector.load %arg3[%c5_54, %c0_55, %c0_56] : memref<8x18x128xf32, #tpu.memory_space<vmem>>, vector<1x18x128xf32>
    %91 = vector.shape_cast %90 : vector<1x18x128xf32> to vector<18x128xf32>
    %92 = vector.shape_cast %11 : vector<18x128xf32> to vector<1x18x128xf32>
    tpu.vector_store %arg3[%c5_54, %c0_55, %c0_56], %92 {strides = array<i32>} : memref<8x18x128xf32, #tpu.memory_space<vmem>>, vector<1x18x128xf32>,
    %c6 = arith.constant 6 : index
    %c0_57 = arith.constant 0 : index
    %c0_58 = arith.constant 0 : index
    %93 = vector.load %arg3[%c6, %c0_57, %c0_58] : memref<8x18x128xf32, #tpu.memory_space<vmem>>, vector<1x18x128xf32>
    %94 = vector.shape_cast %93 : vector<1x18x128xf32> to vector<18x128xf32>
    %95 = vector.shape_cast %74 : vector<18x128xf32> to vector<1x18x128xf32>
    tpu.vector_store %arg3[%c6, %c0_57, %c0_58], %95 {strides = array<i32>} : memref<8x18x128xf32, #tpu.memory_space<vmem>>, vector<1x18x128xf32>,
    %cst_59 = arith.constant 0.000000e+00 : f32
    %96 = vector.broadcast %cst_59 : f32 to vector<18x128xf32>
    %c7 = arith.constant 7 : index
    %c0_60 = arith.constant 0 : index
    %c0_61 = arith.constant 0 : index
    %97 = vector.load %arg3[%c7, %c0_60, %c0_61] : memref<8x18x128xf32, #tpu.memory_space<vmem>>, vector<1x18x128xf32>
    %98 = vector.shape_cast %97 : vector<1x18x128xf32> to vector<18x128xf32>
    %99 = vector.shape_cast %96 : vector<18x128xf32> to vector<1x18x128xf32>
    tpu.vector_store %arg3[%c7, %c0_60, %c0_61], %99 {strides = array<i32>} : memref<8x18x128xf32, #tpu.memory_space<vmem>>, vector<1x18x128xf32>,
    return
  }
  func.func @transform_0(%arg0: i32) -> (i32, i32, i32) {
    %c0_i32 = arith.constant 0 : i32
    %c0_i32_0 = arith.constant 0 : i32
    %c0_i32_1 = arith.constant 0 : i32
    return %c0_i32, %arg0, %c0_i32_0 : i32, i32, i32
  }
  func.func @transform_1(%arg0: i32) -> (i32, i32, i32) {
    %c0_i32 = arith.constant 0 : i32
    %c0_i32_0 = arith.constant 0 : i32
    %c0_i32_1 = arith.constant 0 : i32
    return %c0_i32, %arg0, %c0_i32_0 : i32, i32, i32
  }
  func.func @transform_2(%arg0: i32) -> (i32, i32, i32) {
    %c0_i32 = arith.constant 0 : i32
    %c0_i32_0 = arith.constant 0 : i32
    %c0_i32_1 = arith.constant 0 : i32
    return %c0_i32, %arg0, %c0_i32_0 : i32, i32, i32
  }
}

</mosaic_0001>

<bundles_post_ra>
// kernel: device_fn.3
= control target key start
LH: loop header
LB: loop body
LE: loop exit
PB: predicated region body
PF: predicated region fallthrough
CT: control target
= control target key end

     0   :  { %v262_v1 = vmov 0.0   ;;  %s458_s0 = inlined_call_operand.vmem [shape: f32[6,18,128], index: 0, kind: input, shape index: {}]   ;;  %s459_s2 = inlined_call_operand.vmem [shape: f32[8,18,128], index: 2, kind: output, shape index: {}]   ;;  %s460_s1 = inlined_call_operand.vmem [shape: f32[4,18,128], index: 1, kind: input, shape index: {}]  }
   0x1   :  { %v204_v0 = vld [vmem:[%s458_s0 + $0x30] sm:$0xff]  ;;  %246 = vst [vmem:[%s459_s2 + $0xa8] sm:$0xff] %v262_v1  ;;  %247 = vst [vmem:[%s459_s2 + $0xb0] sm:$0xff] %v262_v1  ;;  %v205_v3 = vld [vmem:[%s458_s0 + $0x38] sm:$0xff] }
   0x2   :  { %248 = vst [vmem:[%s459_s2 + $0xb8] sm:$0x3] %v262_v1  ;;  %v79_v2 = vmul.f32 1.442695, %v204_v0  ;;  %v81_v4 = vmul.f32 1.442695, %v205_v3 }
   0x3   :  { %v206_v5 = vld [vmem:[%s458_s0 + $0x40] sm:$0x3]  ;;  %v207_v6 = vld [vmem:[%s458_s0 + $0x48] sm:$0xff]  ;;  %v219_v8 = vld [vmem:[%s460_s1 + $0x30] sm:$0xff] }
   0x4   :  { %250 = vpow2.f32 %v79_v2  ;;  %v34_v7 = vld [vmem:[%s460_s1] sm:$0xff]  ;;  %v83_v9 = vmul.f32 1.442695, %v206_v5  ;;  %v208_v10 = vld [vmem:[%s458_s0 + $0x50] sm:$0xff]  ;;  %v35_v11 = vld [vmem:[%s460_s1 + $0x8] sm:$0xff] }
   0x5   :  { %252 = vpow2.f32 %v81_v4  ;;  %v220_v12 = vld [vmem:[%s460_s1 + $0x38] sm:$0xff]  ;;  %v88_v13 = vmul.f32 1.442695, %v207_v6  ;;  %v320_v14 = vld [vmem:[%s458_s0 + $0x60] sm:$0xff]  ;;  %v55_v16 = vadd.f32 %v219_v8, %v34_v7  ;;  %v335_v18 = vld [vmem:[%s458_s0 + $0x68] sm:$0xff]  ;;  %v49_v19 = vsub.f32 %v219_v8, %v34_v7 }
   0x6   :  { %254 = vpow2.f32 %v83_v9  ;;  %v11_v15 = vld [vmem:[%s458_s0] sm:$0xff]  ;;  %v209_v17 = vld [vmem:[%s458_s0 + $0x58] sm:$0x3]  ;;  %237 = vst [vmem:[%s459_s2 + $0x60] sm:$0xff] %v320_v14  ;;  %v90_v20 = vmul.f32 1.442695, %v208_v10  ;;  %v50_v24 = vsub.f32 %v220_v12, %v35_v11  ;;  %v56_v25 = vadd.f32 %v220_v12, %v35_v11 }
   0x7   :  { %256 = vpow2.f32 %v88_v13  ;;  %238 = vst [vmem:[%s459_s2 + $0x68] sm:$0xff] %v335_v18  ;;  %v344_v21 = vld [vmem:[%s458_s0 + $0x70] sm:$0x3]  ;;  %v213_v22 = vld [vmem:[%s458_s0 + $0x78] sm:$0xff]  ;;  %v214_v23 = vld [vmem:[%s458_s0 + $0x80] sm:$0xff]  ;;  %v58_v33 = vmul.f32 0.5, %v55_v16  ;;  %v67_v36 = vmul.f32 %v49_v19, %v11_v15 }
   0x8   :  { %v36_v26 = vld [vmem:[%s460_s1 + $0x10] sm:$0x3]  ;;  %v221_v27 = vld [vmem:[%s460_s1 + $0x40] sm:$0x3]  ;;  %239 = vst [vmem:[%s459_s2 + $0x70] sm:$0x3] %v344_v21  ;;  %258 = vpow2.f32 %v90_v20 }
   0x9   :  { %240 = vst [vmem:[%s459_s2 + $0x78] sm:$0xff] %v213_v22  ;;  %241 = vst [vmem:[%s459_s2 + $0x80] sm:$0xff] %v214_v23  ;;  %v215_v28 = vld [vmem:[%s458_s0 + $0x88] sm:$0x3]  ;;  %v216_v30 = vld [vmem:[%s460_s1 + $0x18] sm:$0xff]  ;;  %v51_v37 = vsub.f32 %v221_v27, %v36_v26  ;;  %v57_v38 = vadd.f32 %v221_v27, %v36_v26  ;;  %v59_v41 = vmul.f32 0.5, %v56_v25  ;;  %v70_v53 = vadd.f32 %v67_v36, %v58_v33 }
   0xa   :  { %v12_v29 = vld [vmem:[%s458_s0 + $0x8] sm:$0xff]  ;;  %v92_v32 = vmul.f32 1.442695, %v209_v17  ;;  %242 = vst [vmem:[%s459_s2 + $0x88] sm:$0x3] %v215_v28  ;;  %v217_v34 = vld [vmem:[%s460_s1 + $0x20] sm:$0xff] }
   0xb   :  { %v222_v31 = vld [vmem:[%s460_s1 + $0x48] sm:$0xff]  ;;  %v223_v35 = vld [vmem:[%s460_s1 + $0x50] sm:$0xff]  ;;  %v224_v40 = vld [vmem:[%s460_s1 + $0x58] sm:$0x3]  ;;  %v68_v42 = vmul.f32 %v50_v24, %v12_v29  ;;  %v60_v55 = vmul.f32 0.5, %v57_v38 }
   0xc   :  { %v218_v39 = vld [vmem:[%s460_s1 + $0x28] sm:$0x3]  ;;  %260 = vpow2.f32 %v92_v32  ;;  %v13_v43 = vld [vmem:[%s458_s0 + $0x10] sm:$0x3]  ;;  %v52_v44 = vsub.f32 %v222_v31, %v216_v30  ;;  %v61_v45 = vadd.f32 %v222_v31, %v216_v30  ;;  %v201_v46 = vld [vmem:[%s458_s0 + $0x18] sm:$0xff]  ;;  %v62_v47 = vadd.f32 %v223_v35, %v217_v34 }
   0xd   :  { %v53_v49 = vsub.f32 %v223_v35, %v217_v34  ;;  %v54_v50 = vsub.f32 %v224_v40, %v218_v39  ;;  %v63_v51 = vadd.f32 %v224_v40, %v218_v39  ;;  %v69_v56 = vmul.f32 %v51_v37, %v13_v43  ;;  %v202_v57 = vld [vmem:[%s458_s0 + $0x20] sm:$0xff]  ;;  %v203_v58 = vld [vmem:[%s458_s0 + $0x28] sm:$0x3] }
   0xe   :  { %v71_v59 = vadd.f32 %v68_v42, %v59_v41  ;;  %v64_v61 = vmul.f32 0.5, %v61_v45  ;;  %v73_v62 = vmul.f32 %v201_v46, %v52_v44  ;;  %v65_v0 = vmul.f32 0.5, %v62_v47 }
   0xf   :  { %v74_v4 = vmul.f32 %v202_v57, %v53_v49  ;;  %v66_v5 = vmul.f32 0.5, %v63_v51  ;;  %v75_v6 = vmul.f32 %v203_v58, %v54_v50  ;;  %v72_v8 = vadd.f32 %v69_v56, %v60_v55 }
  0x10   :  { %v76_v13 = vadd.f32 %v73_v62, %v64_v61  ;;  %vm151_vm0 = vcmp.gt.f32.partialorder %v320_v14, 0.2  ;;  %vm152_vm1 = vcmp.gt.f32.partialorder %v335_v18, 0.2  ;;  %vm153_vm3 = vcmp.gt.f32.partialorder %v344_v21, 0.2 }
  0x11   :  { %v251_v48 = vpop.eup %250  ;;  %v78_v25 = vadd.f32 %v75_v6, %v66_v5 }
  0x12   :  { %v253_v52 = vpop.eup %252  ;;  %v85_v54 = vmul.f32 %v251_v48, %v49_v19 }
  0x13   :  { %v86_v60 = vmul.f32 %v253_v52, %v50_v24  ;;  %v255_v2 = vpop.eup %254  ;;  %v77_v24 = vadd.f32 %v74_v4, %v65_v0 }
  0x14   :  { %v97_v63 = vmul.f32 0.5, %v85_v54  ;;  %v87_v9 = vmul.f32 %v255_v2, %v51_v37  ;;  %v257_v11 = vpop.eup %256 }
  0x15   :  { %v98_v3 = vmul.f32 0.5, %v86_v60  ;;  %v94_v19 = vmul.f32 %v257_v11, %v52_v44  ;;  %v259_v22 = vpop.eup %258 }
  0x16   :  { %v100_v7 = vsub.f32 %v70_v53, %v97_v63  ;;  %v121_v10 = vadd.f32 %v97_v63, %v70_v53  ;;  %v99_v17 = vmul.f32 0.5, %v87_v9  ;;  %v95_v30 = vmul.f32 %v259_v22, %v53_v49 }
  0x17   :  { %v101_v12 = vsub.f32 %v71_v59, %v98_v3  ;;  %v122_v15 = vadd.f32 %v98_v3, %v71_v59  ;;  %v109_v29 = vmul.f32 0.5, %v94_v19 }
  0x18   :  { %v103_v16 = vmax.f32 %v100_v7, 0.0  ;;  %v124_v20 = vmax.f32 %v121_v10, 0.0  ;;  %v102_v28 = vsub.f32 %v72_v8, %v99_v17  ;;  %v123_v35 = vadd.f32 %v99_v17, %v72_v8 }
  0x19   :  { %v104_v23 = vmax.f32 %v101_v12, 0.0  ;;  %v125_v26 = vmax.f32 %v122_v15, 0.0  ;;  %v261_v31 = vpop.eup %260  ;;  %v112_v37 = vsub.f32 %v76_v13, %v109_v29  ;;  %v110_v38 = vmul.f32 0.5, %v95_v30 }
  0x1a   :  { %v106_v27 = vmin.f32 %v103_v16, 512.0  ;;  %v127_v33 = vmin.f32 %v124_v20, 512.0  ;;  %v105_v36 = vmax.f32 %v102_v28, 0.0  ;;  %v96_v39 = vmul.f32 %v261_v31, %v54_v50 }
  0x1b   :  { %v107_v32 = vmin.f32 %v104_v23, 512.0  ;;  %v128_v34 = vmin.f32 %v125_v26, 512.0  ;;  %v126_v40 = vmax.f32 %v123_v35, 0.0  ;;  %v130_v41 = vadd.f32 %v109_v29, %v76_v13 }
  0x1c   :  { %166 = vst [vmem:[%s459_s2] sm:$0xff] %v106_v27  ;;  %231 = vst [vmem:[%s459_s2 + $0x30] sm:$0xff] %v127_v33  ;;  %v108_v42 = vmin.f32 %v105_v36, 512.0  ;;  %v115_v43 = vmax.f32 %v112_v37, 0.0  ;;  %v113_v44 = vsub.f32 %v77_v24, %v110_v38  ;;  %v111_v45 = vmul.f32 0.5, %v96_v39 }
  0x1d   :  { %167 = vst [vmem:[%s459_s2 + $0x8] sm:$0xff] %v107_v32  ;;  %232 = vst [vmem:[%s459_s2 + $0x38] sm:$0xff] %v128_v34  ;;  %v129_v46 = vmin.f32 %v126_v40, 512.0  ;;  %v133_v47 = vmax.f32 %v130_v41, 0.0  ;;  %v131_v48 = vadd.f32 %v110_v38, %v77_v24  ;;  %v139_v53 = vsub.f32 %v106_v27, %v127_v33 }
  0x1e   :  { %168 = vst [vmem:[%s459_s2 + $0x10] sm:$0x3] %v108_v42  ;;  %v118_v49 = vmin.f32 %v115_v43, 512.0  ;;  %v116_v50 = vmax.f32 %v113_v44, 0.0  ;;  %v114_v51 = vsub.f32 %v78_v25, %v111_v45  ;;  %v132_v52 = vadd.f32 %v111_v45, %v78_v25 }
  0x1f   :  { %233 = vst [vmem:[%s459_s2 + $0x40] sm:$0x3] %v129_v46  ;;  %v136_v54 = vmin.f32 %v133_v47, 512.0  ;;  %v134_v55 = vmax.f32 %v131_v48, 0.0  ;;  %v140_v59 = vsub.f32 %v107_v32, %v128_v34  ;;  %v141_v63 = vsub.f32 %v108_v42, %v129_v46 }
  0x20   :  { %228 = vst [vmem:[%s459_s2 + $0x18] sm:$0xff] %v118_v49  ;;  %v119_v56 = vmin.f32 %v116_v50, 512.0  ;;  %v117_v57 = vmax.f32 %v114_v51, 0.0  ;;  %v135_v58 = vmax.f32 %v132_v52, 0.0 }
  0x21   :  { %v142_v60 = vsub.f32 %v118_v49, %v136_v54  ;;  %234 = vst [vmem:[%s459_s2 + $0x48] sm:$0xff] %v136_v54  ;;  %v137_v61 = vmin.f32 %v134_v55, 512.0 }
  0x22   :  { %229 = vst [vmem:[%s459_s2 + $0x20] sm:$0xff] %v119_v56  ;;  %v120_v62 = vmin.f32 %v117_v57, 512.0  ;;  %v138_v0 = vmin.f32 %v135_v58, 512.0 }
  0x23   :  { %v143_v2 = vsub.f32 %v119_v56, %v137_v61  ;;  %235 = vst [vmem:[%s459_s2 + $0x50] sm:$0xff] %v137_v61  ;;  %v145_v3 = vmul.f32 %v142_v60, %v139_v53 }
  0x24   :  { %230 = vst [vmem:[%s459_s2 + $0x28] sm:$0x3] %v120_v62  ;;  %v144_v4 = vsub.f32 %v120_v62, %v138_v0  ;;  %236 = vst [vmem:[%s459_s2 + $0x58] sm:$0x3] %v138_v0 }
  0x25   :  { %v148_v5 = vand.u32 2147483647, %v145_v3  ;;  %v146_v6 = vmul.f32 %v143_v2, %v140_v59 }
  0x26   :  { %v147_v7 = vmul.f32 %v144_v4, %v141_v63 }
  0x27   :  { %vm154_vm2 = vcmp.gt.f32.partialorder %v148_v5, 100.0  ;;  %v149_v8 = vand.u32 2147483647, %v146_v6 }
  0x28   :  { %vm157_vm4 = vmand %vm151_vm0, %vm154_vm2  ;;  %v150_v9 = vand.u32 2147483647, %v147_v7 }
  0x29   :  { %v225_v10 = vsel %vm157_vm4, 1.0, %v262_v1  ;;  %vm155_vm5 = vcmp.gt.f32.partialorder %v149_v8, 100.0 }
  0x2a   :  { %243 = vst [vmem:[%s459_s2 + $0x90] sm:$0xff] %v225_v10  ;;  %vm158_vm6 = vmand %vm152_vm1, %vm155_vm5  ;;  %vm156_vm7 = vcmp.gt.f32.partialorder %v150_v9, 100.0 }
  0x2b   :  { %v226_v14 = vsel %vm158_vm6, 1.0, %v262_v1  ;;  %vm159_vm8 = vmand %vm153_vm3, %vm156_vm7 }
  0x2c   :  { %244 = vst [vmem:[%s459_s2 + $0x98] sm:$0xff] %v226_v14  ;;  %v227_v18 = vsel %vm159_vm8, 1.0, %v262_v1 }
  0x2d   :  { %245 = vst [vmem:[%s459_s2 + $0xa0] sm:$0x3] %v227_v18 }

// kernel: device_fn.2
= control target key start
LH: loop header
LB: loop body
LE: loop exit
PB: predicated region body
PF: predicated region fallthrough
CT: control target
= control target key end

     0   :  { %s2677_s18 = smov 0   ;;  %s3244_s0 = inlined_call_operand.vmem [shape: f32[18,18,8], index: 0, kind: input, shape index: {}]   ;;  %s3245_s1 = inlined_call_operand.vmem [shape: bf16[9,8,128], index: 1, kind: input, shape index: {}]   ;;  %s3246_s2 = inlined_call_operand.vmem [shape: f32[1,128], index: 2, kind: input, shape index: {}]   ;;  %s3247_s3 = inlined_call_operand.vmem [shape: bf16[128,128], index: 3, kind: input, shape index: {}]   ;;  %s3248_s4 = inlined_call_operand.vmem [shape: f32[1,128], index: 4, kind: input, shape index: {}]   ;;  %s3249_s5 = inlined_call_operand.vmem [shape: bf16[256,128], index: 5, kind: output, shape index: {}]  }
   0x1 LB: > { %s2044_s19 = sadd.s32 4294967295, %s2645_s18   ;;  %p2047_p0 = scmp.ge.s32.totalorder %s2645_s18, 1  ;;  %s2645_s18 = sphi %s2677_s18, %s15_s18  }
   0x2   : > { %p177_p1 = scmp.lt.s32.totalorder %s2645_s18, 3 }
   0x4   : > { %p178_p2 = pnand %p2047_p0, %p177_p1 }
   0x6   : > { %181 = sbr.rel (%p178_p2) target bundleno = 585 (0x249), region = 40 }
   0xb   : > { %v2052_v0 = vld [vmem:[%s3245_s1 + $0x4] sm:$0xf]  ;;  %vm286_vm0 = vcmask 1043456   ;;  %v234_v1 = vld [vmem:[%s3245_s1] sm:$0xf]  ;;  %s2051_s24 = smul.u32 192, %s2044_s19 }
   0xc   : > { %2614 = vmatprep.subr.msk.bf16.mxu0 %vm286_vm0, %v2052_v0  ;;  %v288_v2 = vsel %vm286_vm0, %v2052_v0, 0  ;;  %2615 = vmatprep.subr.msk.bf16.mxu1 %vm286_vm0, %v234_v1  ;;  %v412_v3 = vsel %vm286_vm0, %v234_v1, 0  ;;  %v2069_v4 = vld [vmem:[%s3245_s1 + $0x8] sm:$0xf]  ;;  %v2096_v5 = vld [vmem:[%s3245_s1 + $0xc] sm:$0xf] }
   0xd   : > { %2421 = vmatpush3.bf16.msra.mxu0 %v288_v2  ;;  %2439 = vmatpush3.bf16.msra.mxu1 %v412_v3  ;;  %s2703_s29 = scalar_lea.vmem %s3244_s0, %s2051_s24  ;;  %vm261_vm1 = vcmask 64512   ;;  %v562_v17 = vsel %vm286_vm0, %v2069_v4, 0  ;;  %v731_v25 = vsel %vm286_vm0, %v2096_v5, 0  ;;  %v2121_v26 = vld [vmem:[%s3245_s1 + $0x10] sm:$0xf]  ;;  %s2048_s12 = sshll.u32 %s2044_s19, 4 }
   0xe   : > { %v235_v6 = vld [vmem:[%s2703_s29 + $0x1] sm:$0xff]  ;;  %v236_v7 = vld [vmem:[%s2703_s29 + $0x9] sm:$0xff]  ;;  %2616 = vmatprep.subr.msk.bf16.mxu0 %vm286_vm0, %v2069_v4  ;;  %2617 = vmatprep.subr.msk.bf16.mxu1 %vm286_vm0, %v2096_v5  ;;  %v237_v11 = vld [vmem:[%s2703_s29 + $0x19] sm:$0xff]  ;;  %v897_v2 = vsel %vm286_vm0, %v2121_v26, 0  ;;  %p201_p3 = scmp.lt.s32.totalorder %s2048_s12, 31 }
   0xf   : > { %v210_v8 = vld [vmem:[%s2703_s29] sm:$0xff]  ;;  %v251_v9 = vpack.c.bf16 %v236_v7, %v235_v6  ;;  %v211_v10 = vld [vmem:[%s2703_s29 + $0x8] sm:$0xff]  ;;  %v212_v15 = vld [vmem:[%s2703_s29 + $0x18] sm:$0xff] }
  0x10   : > { %v238_v12 = vld [vmem:[%s2703_s29 + $0x21] sm:$0xff]  ;;  %v226_v13 = vpack.c.bf16 %v211_v10, %v210_v8  ;;  %v239_v18 = vld [vmem:[%s2703_s29 + $0x31] sm:$0xff]  ;;  %v240_v20 = vld [vmem:[%s2703_s29 + $0x39] sm:$0xff]  ;;  %s3307_s12 = smov (!%p201_p3, %s2048_s12), 31 }
  0x11   : > { %v2716_v14 = vpack.c.bf16 %v238_v12, %v237_v11  ;;  %v213_v16 = vld [vmem:[%s2703_s29 + $0x20] sm:$0xff]  ;;  %2422 = vmatprep.mubr.msk.bf16.mxu0 %vm261_vm1, %v251_v9  ;;  %v214_v21 = vld [vmem:[%s2703_s29 + $0x30] sm:$0xff]  ;;  %v215_v22 = vld [vmem:[%s2703_s29 + $0x38] sm:$0xff]  ;;  %v2731_v23 = vpack.c.bf16 %v240_v20, %v239_v18  ;;  %s2049_s15 = sshll.u32 %s3307_s12, 2 }
  0x12   : > { %v2723_v19 = vpack.c.bf16 %v213_v16, %v212_v15  ;;  %2440 = vmatprep.mubr.msk.bf16.mxu1 %vm261_vm1, %v226_v13  ;;  %v2733_v24 = vpack.c.bf16 %v215_v22, %v214_v21  ;;  %v241_v27 = vld [vmem:[%s2703_s29 + $0x49] sm:$0xff]  ;;  %v242_v28 = vld [vmem:[%s2703_s29 + $0x51] sm:$0xff]  ;;  %v243_v31 = vld [vmem:[%s2703_s29 + $0x61] sm:$0xff]  ;;  %s3231_s19 = scalar_lea.vmem %s3249_s5, %s2049_s15 }
  0x13   : > { %2423 = vmatmul.mubr.msk.bf16.vlgmr.msra.gmra.mxu0 %vm261_vm1, %v2716_v14  ;;  %v216_v29 = vld [vmem:[%s2703_s29 + $0x48] sm:$0xff]  ;;  %v217_v30 = vld [vmem:[%s2703_s29 + $0x50] sm:$0xff]  ;;  %v218_v33 = vld [vmem:[%s2703_s29 + $0x60] sm:$0xff]  ;;  %v2754_v35 = vpack.c.bf16 %v242_v28, %v241_v27 }
  0x14   : > { %2441 = vmatmul.mubr.msk.bf16.vlgmr.msra.gmra.mxu1 %vm261_vm1, %v2723_v19  ;;  %2457 = vmatpush3.bf16.msra.mxu0 %v562_v17  ;;  %v244_v32 = vld [vmem:[%s2703_s29 + $0x69] sm:$0xff]  ;;  %v2756_v36 = vpack.c.bf16 %v217_v30, %v216_v29  ;;  %v245_v39 = vld [vmem:[%s2703_s29 + $0x79] sm:$0xff]  ;;  %v246_v40 = vld [vmem:[%s2703_s29 + $0x81] sm:$0xff] }
  0x15   : > { %2426 = vmatprep.mubr.msk.bf16.mxu0 %vm261_vm1, %v2731_v23  ;;  %2444 = vmatprep.mubr.msk.bf16.mxu1 %vm261_vm1, %v2733_v24  ;;  %v219_v34 = vld [vmem:[%s2703_s29 + $0x68] sm:$0xff]  ;;  %v2758_v37 = vpack.c.bf16 %v244_v32, %v243_v31  ;;  %v220_v41 = vld [vmem:[%s2703_s29 + $0x78] sm:$0xff]  ;;  %v221_v42 = vld [vmem:[%s2703_s29 + $0x80] sm:$0xff]  ;;  %v2778_v47 = vpack.c.bf16 %v246_v40, %v245_v39 }
  0x16   : > { %2475 = vmatpush3.bf16.msra.mxu1 %v731_v25  ;;  %2618 = vmatprep.subr.msk.bf16.mxu0 %vm286_vm0, %v2121_v26  ;;  %v2760_v38 = vpack.c.bf16 %v219_v34, %v218_v33  ;;  %v247_v43 = vld [vmem:[%s2703_s29 + $0x91] sm:$0xff]  ;;  %v248_v44 = vld [vmem:[%s2703_s29 + $0x99] sm:$0xff]  ;;  %v2783_v49 = vpack.c.bf16 %v221_v42, %v220_v41  ;;  %v249_v52 = vld [vmem:[%s2703_s29 + $0xa9] sm:$0xff] }
  0x17   : > { %v222_v45 = vld [vmem:[%s2703_s29 + $0x90] sm:$0xff]  ;;  %v223_v46 = vld [vmem:[%s2703_s29 + $0x98] sm:$0xff]  ;;  %v2785_v50 = vpack.c.bf16 %v248_v44, %v247_v43  ;;  %v224_v54 = vld [vmem:[%s2703_s29 + $0xa8] sm:$0xff] }
  0x18   : > { %v2146_v48 = vld [vmem:[%s3245_s1 + $0x14] sm:$0xf]  ;;  %v2788_v51 = vpack.c.bf16 %v223_v46, %v222_v45  ;;  %v511_v56 = vld [vmem:[%s2703_s29 + $0x2] sm:$0xff]  ;;  %v512_v57 = vld [vmem:[%s2703_s29 + $0xa] sm:$0xff] }
  0x19   : > { %2619 = vmatprep.subr.msk.bf16.mxu1 %vm286_vm0, %v2146_v48  ;;  %v250_v53 = vld [vmem:[%s2703_s29 + $0xb1] sm:$0xff]  ;;  %v527_v60 = vpack.c.bf16 %v512_v57, %v511_v56  ;;  %v513_v61 = vld [vmem:[%s2703_s29 + $0x1a] sm:$0xff]  ;;  %v514_v62 = vld [vmem:[%s2703_s29 + $0x22] sm:$0xff]  ;;  %v1063_v4 = vsel %vm286_vm0, %v2146_v48, 0 }
  0x1a   : > { %v225_v55 = vld [vmem:[%s2703_s29 + $0xb0] sm:$0xff]  ;;  %v2804_v58 = vpack.c.bf16 %v250_v53, %v249_v52  ;;  %v516_v0 = vld [vmem:[%s2703_s29 + $0x3a] sm:$0xff]  ;;  %v528_v1 = vpack.c.bf16 %v514_v62, %v513_v61  ;;  %v519_v9 = vld [vmem:[%s2703_s29 + $0x62] sm:$0xff] }
  0x1b   : > { %2427 = vmatmul.mubr.msk.bf16.gmra.mxu0 %vm261_vm1, %v2754_v35  ;;  %v2806_v59 = vpack.c.bf16 %v225_v55, %v224_v54  ;;  %v515_v63 = vld [vmem:[%s2703_s29 + $0x32] sm:$0xff]  ;;  %v517_v6 = vld [vmem:[%s2703_s29 + $0x4a] sm:$0xff]  ;;  %v2198_v8 = vld [vmem:[%s3245_s1 + $0x1c] sm:$0xf] }
  0x1c   : > { %2445 = vmatmul.mubr.msk.bf16.gmra.mxu1 %vm261_vm1, %v2756_v36  ;;  %2430 = vmatprep.mubr.msk.bf16.mxu0 %vm261_vm1, %v2758_v37  ;;  %v2820_v3 = vpack.c.bf16 %v516_v0, %v515_v63  ;;  %v2173_v5 = vld [vmem:[%s3245_s1 + $0x18] sm:$0xf]  ;;  %v520_v10 = vld [vmem:[%s2703_s29 + $0x6a] sm:$0xff]  ;;  %v522_v15 = vld [vmem:[%s2703_s29 + $0x82] sm:$0xff]  ;;  %v1398_v29 = vsel %vm286_vm0, %v2198_v8, 0 }
  0x1d   : > { %2448 = vmatprep.mubr.msk.bf16.mxu1 %vm261_vm1, %v2760_v38  ;;  %v518_v7 = vld [vmem:[%s2703_s29 + $0x52] sm:$0xff]  ;;  %v2844_v12 = vpack.c.bf16 %v520_v10, %v519_v9  ;;  %v521_v13 = vld [vmem:[%s2703_s29 + $0x7a] sm:$0xff]  ;;  %v525_v20 = vld [vmem:[%s2703_s29 + $0xaa] sm:$0xff]  ;;  %v1232_v28 = vsel %vm286_vm0, %v2173_v5, 0 }
  0x1e   : > { %v2841_v11 = vpack.c.bf16 %v518_v7, %v517_v6  ;;  %v523_v16 = vld [vmem:[%s2703_s29 + $0x92] sm:$0xff]  ;;  %v524_v17 = vld [vmem:[%s2703_s29 + $0x9a] sm:$0xff]  ;;  %v2858_v18 = vpack.c.bf16 %v522_v15, %v521_v13  ;;  %v2095_v25 = vld [vmem:[%s2703_s29 + $0xc8] sm:$0xff] }
  0x1f   : > { %v526_v21 = vld [vmem:[%s2703_s29 + $0xb2] sm:$0xff]  ;;  %v2094_v22 = vld [vmem:[%s2703_s29 + $0xc0] sm:$0xff]  ;;  %v2120_v31 = vld [vmem:[%s2703_s29 + $0xc9] sm:$0xff] }
  0x20   : > { %v534_v26 = vpack.c.bf16 %v526_v21, %v525_v20  ;;  %v703_v27 = vpack.c.bf16 %v2095_v25, %v2094_v22  ;;  %v2223_v30 = vld [vmem:[%s3245_s1 + $0x20] sm:$0xf]  ;;  %v2145_v33 = vld [vmem:[%s2703_s29 + $0xca] sm:$0xff]  ;;  %v2631_v44 = vld [vmem:[%s3247_s3 + $0x38] sm:$0xff]  }
  0x21   : > { %v2144_v32 = vld [vmem:[%s2703_s29 + $0xc2] sm:$0xff]  ;;  %v1564_v40 = vsel %vm286_vm0, %v2223_v30, 0  ;;  %v2221_v41 = vld [vmem:[%s2703_s29 + $0xda] sm:$0xff]  ;;  %v2632_v45 = vld [vmem:[%s3247_s3 + $0x30] sm:$0xff]  }
  0x22   : > { %v1035_v39 = vpack.c.bf16 %v2145_v33, %v2144_v32  ;;  %v2222_v42 = vld [vmem:[%s2703_s29 + $0xe2] sm:$0xff]  ;;  %v2635_v48 = vld [vmem:[%s3247_s3 + $0x18] sm:$0xff]   ;;  %v2636_v54 = vld [vmem:[%s3247_s3 + $0x10] sm:$0xff]  }
  0x23   : > { %2431 = vmatmul.mubr.msk.bf16.gmra.mxu0 %vm261_vm1, %v2778_v47  ;;  %v1536_v43 = vpack.c.bf16 %v2222_v42, %v2221_v41  ;;  %v2633_v46 = vld [vmem:[%s3247_s3 + $0x28] sm:$0xff]  }
  0x24   : > { %2449 = vmatmul.mubr.msk.bf16.gmra.mxu1 %vm261_vm1, %v2783_v49  ;;  %2434 = vmatprep.mubr.msk.bf16.mxu0 %vm261_vm1, %v2785_v50  ;;  %v2637_v61 = vld [vmem:[%s3247_s3 + $0x8] sm:$0xff]  }
  0x25   : > { %2452 = vmatprep.mubr.msk.bf16.mxu1 %vm261_vm1, %v2788_v51 }
  0x2b   : > { %2435 = vmatmul.mubr.msk.bf16.gmra.mxu0 %vm261_vm1, %v2804_v58 }
  0x2c   : > { %2453 = vmatmul.mubr.msk.bf16.gmra.mxu1 %vm261_vm1, %v2806_v59  ;;  %2458 = vmatprep.mubr.msk.bf16.mxu0 %vm261_vm1, %v527_v60 }
  0x2d   : > { %2476 = vmatprep.mubr.msk.bf16.mxu1 %vm261_vm1, %v2723_v19  ;;  %v2860_v19 = vpack.c.bf16 %v524_v17, %v523_v16 }
  0x33   : > { %2459 = vmatmul.mubr.msk.bf16.vlgmr.msra.gmra.mxu0 %vm261_vm1, %v528_v1 }
  0x34   : > { %2493 = vmatpush3.bf16.msra.mxu0 %v897_v2  ;;  %2477 = vmatmul.mubr.msk.bf16.vlgmr.msra.gmra.mxu1 %vm261_vm1, %v2733_v24 }
  0x35   : > { %2462 = vmatprep.mubr.msk.bf16.mxu0 %vm261_vm1, %v2820_v3  ;;  %2480 = vmatprep.mubr.msk.bf16.mxu1 %vm261_vm1, %v2756_v36 }
  0x36   : > { %2511 = vmatpush3.bf16.msra.mxu1 %v1063_v4  ;;  %2620 = vmatprep.subr.msk.bf16.mxu0 %vm286_vm0, %v2173_v5  ;;  %v2638_v4 = vld [vmem:[%s3247_s3] sm:$0xff]  }
  0x37   : > { %2621 = vmatprep.subr.msk.bf16.mxu1 %vm286_vm0, %v2198_v8 }
  0x3b   : > { %2463 = vmatmul.mubr.msk.bf16.gmra.mxu0 %vm261_vm1, %v2841_v11 }
  0x3c   : > { %2481 = vmatmul.mubr.msk.bf16.gmra.mxu1 %vm261_vm1, %v2760_v38  ;;  %2466 = vmatprep.mubr.msk.bf16.mxu0 %vm261_vm1, %v2844_v12 }
  0x3d   : > { %2484 = vmatprep.mubr.msk.bf16.mxu1 %vm261_vm1, %v2783_v49 }
  0x43   : > { %2467 = vmatmul.mubr.msk.bf16.gmra.mxu0 %vm261_vm1, %v2858_v18 }
  0x44   : > { %2485 = vmatmul.mubr.msk.bf16.gmra.mxu1 %vm261_vm1, %v2788_v51  ;;  %2470 = vmatprep.mubr.msk.bf16.mxu0 %vm261_vm1, %v2860_v19 }
  0x45   : > { %2488 = vmatprep.mubr.msk.bf16.mxu1 %vm261_vm1, %v2806_v59 }
  0x4b   : > { %2471 = vmatmul.mubr.msk.bf16.gmra.mxu0 %vm261_vm1, %v534_v26 }
  0x4c   : > { %2489 = vmatmul.mubr.msk.bf16.gmra.mxu1 %vm261_vm1, %v703_v27  ;;  %2494 = vmatprep.mubr.msk.bf16.mxu0 %vm261_vm1, %v2716_v14  ;;  %v2119_v14 = vld [vmem:[%s2703_s29 + $0xc1] sm:$0xff] }
  0x4d   : > { %2512 = vmatprep.mubr.msk.bf16.mxu1 %vm261_vm1, %v528_v1  ;;  %v869_v34 = vpack.c.bf16 %v2120_v31, %v2119_v14 }
  0x53   : > { %2495 = vmatmul.mubr.msk.bf16.vlgmr.msra.gmra.mxu0 %vm261_vm1, %v2731_v23 }
  0x54   : > { %2529 = vmatpush3.bf16.msra.mxu0 %v1232_v28  ;;  %2513 = vmatmul.mubr.msk.bf16.vlgmr.msra.gmra.mxu1 %vm261_vm1, %v2820_v3 }
  0x55   : > { %2498 = vmatprep.mubr.msk.bf16.mxu0 %vm261_vm1, %v2754_v35  ;;  %2516 = vmatprep.mubr.msk.bf16.mxu1 %vm261_vm1, %v2841_v11 }
  0x56   : > { %2547 = vmatpush3.bf16.msra.mxu1 %v1398_v29  ;;  %2622 = vmatprep.subr.msk.bf16.mxu0 %vm286_vm0, %v2223_v30 }
  0x57   : > { %2582 = vmatprep.subr.bf16.mxu1 %v2631_v44 }
  0x5b   : > { %2499 = vmatmul.mubr.msk.bf16.gmra.mxu0 %vm261_vm1, %v2758_v37 }
  0x5c   : > { %2517 = vmatmul.mubr.msk.bf16.gmra.mxu1 %vm261_vm1, %v2844_v12  ;;  %2502 = vmatprep.mubr.msk.bf16.mxu0 %vm261_vm1, %v2778_v47 }
  0x5d   : > { %2520 = vmatprep.mubr.msk.bf16.mxu1 %vm261_vm1, %v2858_v18 }
  0x63   : > { %2503 = vmatmul.mubr.msk.bf16.gmra.mxu0 %vm261_vm1, %v2785_v50 }
  0x64   : > { %2521 = vmatmul.mubr.msk.bf16.gmra.mxu1 %vm261_vm1, %v2860_v19  ;;  %2506 = vmatprep.mubr.msk.bf16.mxu0 %vm261_vm1, %v2804_v58 }
  0x65   : > { %2524 = vmatprep.mubr.msk.bf16.mxu1 %vm261_vm1, %v534_v26 }
  0x6b   : > { %2507 = vmatmul.mubr.msk.bf16.gmra.mxu0 %vm261_vm1, %v869_v34 }
  0x6c   : > { %2525 = vmatmul.mubr.msk.bf16.gmra.mxu1 %vm261_vm1, %v1035_v39  ;;  %2530 = vmatprep.mubr.msk.bf16.mxu0 %vm261_vm1, %v2733_v24  ;;  %v2172_v24 = vld [vmem:[%s2703_s29 + $0xe0] sm:$0xff] }
  0x6d   : > { %2548 = vmatprep.mubr.msk.bf16.mxu1 %vm261_vm1, %v2731_v23  ;;  %v2171_v23 = vld [vmem:[%s2703_s29 + $0xd8] sm:$0xff] }
  0x73   : > { %2531 = vmatmul.mubr.msk.bf16.vlgmr.msra.gmra.mxu0 %vm261_vm1, %v2756_v36  ;;  %v2197_v36 = vld [vmem:[%s2703_s29 + $0xe1] sm:$0xff] }
  0x74   : > { %2565 = vmatpush3.bf16.msra.mxu0 %v1564_v40  ;;  %2549 = vmatmul.mubr.msk.bf16.vlgmr.msra.gmra.mxu1 %vm261_vm1, %v2754_v35  ;;  %v2196_v35 = vld [vmem:[%s2703_s29 + $0xd9] sm:$0xff] }
  0x75   : > { %2534 = vmatprep.mubr.msk.bf16.mxu0 %vm261_vm1, %v2760_v38  ;;  %2552 = vmatprep.mubr.msk.bf16.mxu1 %vm261_vm1, %v2758_v37  ;;  %v1204_v37 = vpack.c.bf16 %v2172_v24, %v2171_v23  ;;  %v1370_v38 = vpack.c.bf16 %v2197_v36, %v2196_v35 }
  0x76   : > { %2583 = vmatpush3.bf16.msra.mxu1 %v2631_v44 }
  0x77   : > { %2584 = vmatprep.subr.bf16.mxu1 %v2632_v45 }
  0x7a   : > { %2585 = vmatpush3.bf16.msra.mxu1 %v2632_v45 }
  0x7b   : > { %2535 = vmatmul.mubr.msk.bf16.gmra.mxu0 %vm261_vm1, %v2783_v49  ;;  %2586 = vmatprep.subr.bf16.mxu1 %v2633_v46 }
  0x7c   : > { %2553 = vmatmul.mubr.msk.bf16.gmra.mxu1 %vm261_vm1, %v2778_v47  ;;  %2538 = vmatprep.mubr.msk.bf16.mxu0 %vm261_vm1, %v2788_v51  ;;  %v2634_v47 = vld [vmem:[%s3247_s3 + $0x20] sm:$0xff]  }
  0x7d   : > { %2556 = vmatprep.mubr.msk.bf16.mxu1 %vm261_vm1, %v2785_v50 }
  0x7e   : > { %2587 = vmatpush3.bf16.msra.mxu1 %v2633_v46 }
  0x7f   : > { %2588 = vmatprep.subr.bf16.mxu1 %v2634_v47 }
  0x82   : > { %2589 = vmatpush3.bf16.msra.mxu1 %v2634_v47 }
  0x83   : > { %2539 = vmatmul.mubr.msk.bf16.gmra.mxu0 %vm261_vm1, %v2806_v59  ;;  %2590 = vmatprep.subr.bf16.mxu1 %v2635_v48 }
  0x84   : > { %2557 = vmatmul.mubr.msk.bf16.gmra.mxu1 %vm261_vm1, %v2804_v58  ;;  %2542 = vmatprep.mubr.msk.bf16.mxu0 %vm261_vm1, %v703_v27 }
  0x85   : > { %2560 = vmatprep.mubr.msk.bf16.mxu1 %vm261_vm1, %v869_v34 }
  0x86   : > { %2591 = vmatpush3.bf16.msra.mxu1 %v2635_v48 }
  0x87   : > { %2592 = vmatprep.subr.bf16.mxu1 %v2636_v54 }
  0x8a   : > { %2593 = vmatpush3.bf16.msra.mxu1 %v2636_v54 }
  0x8b   : > { %2543 = vmatmul.mubr.msk.bf16.gmra.mxu0 %vm261_vm1, %v1204_v37  ;;  %2594 = vmatprep.subr.bf16.mxu1 %v2637_v61 }
  0x8c   : > { %2561 = vmatmul.mubr.msk.bf16.gmra.mxu1 %vm261_vm1, %v1370_v38  ;;  %2566 = vmatprep.mubr.msk.bf16.mxu0 %vm261_vm1, %v2820_v3 }
  0x8e   : > { %2595 = vmatpush3.bf16.msra.mxu1 %v2637_v61 }
  0x8f   : > { %2596 = vmatprep.subr.bf16.mxu1 %v2638_v4 }
  0x92   : > { %2597 = vmatpush3.bf16.msra.mxu1 %v2638_v4 }
  0x93   : > { %2567 = vmatmul.mubr.msk.bf16.vlgmr.msra.gmra.mxu0 %vm261_vm1, %v2841_v11 }
  0x94   : > { %2570 = vmatprep.mubr.msk.bf16.mxu0 %vm261_vm1, %v2844_v12 }
  0x9b   : > { %2571 = vmatmul.mubr.msk.bf16.gmra.mxu0 %vm261_vm1, %v2858_v18 }
  0x9c   : > { %2574 = vmatprep.mubr.msk.bf16.mxu0 %vm261_vm1, %v2860_v19 }
  0xa3   : > { %2575 = vmatmul.mubr.msk.bf16.gmra.mxu0 %vm261_vm1, %v534_v26 }
  0xa4   : > { %2578 = vmatprep.mubr.msk.bf16.mxu0 %vm261_vm1, %v1035_v39 }
  0xab   : > { %2579 = vmatmul.mubr.msk.bf16.gmra.mxu0 %vm261_vm1, %v1536_v43 }
  0xd3   : > { %v2424_v49 = vpop.f32.mrf.mxu0 }
  0xd4   : > { %v2442_v50 = vpop.f32.mrf.mxu1 }
  0xd5   : > { %v457_v51 = vadd.f32 %v2442_v50, %v2424_v49  ;;  %v324_v52 = vpop.f32.mrf.mxu0 }
  0xd6   : > { %v448_v53 = vpop.f32.mrf.mxu1 }
  0xd7   : > { %v449_v55 = vadd.f32 %v448_v53, %v324_v52  ;;  %v2425_v56 = vpop.f32.mrf.mxu0 }
  0xd8   : > { %v2443_v57 = vpop.f32.mrf.mxu1 }
  0xd9   : > { %v460_v58 = vadd.f32 %v2443_v57, %v2425_v56  ;;  %v327_v59 = vpop.f32.mrf.mxu0 }
  0xda   : > { %v451_v60 = vpop.f32.mrf.mxu1 }
  0xdb   : > { %v452_v62 = vadd.f32 %v451_v60, %v327_v59  ;;  %v2428_v63 = vpop.f32.mrf.mxu0 }
  0xdc   : > { %v2446_v0 = vpop.f32.mrf.mxu1 }
  0xdd   : > { %v473_v1 = vadd.f32 %v2446_v0, %v2428_v63  ;;  %v340_v2 = vpop.f32.mrf.mxu0 }
  0xde   : > { %v464_v3 = vpop.f32.mrf.mxu1 }
  0xdf   : > { %v465_v5 = vadd.f32 %v464_v3, %v340_v2  ;;  %v2429_v6 = vpop.f32.mrf.mxu0 }
  0xe0   : > { %v2447_v7 = vpop.f32.mrf.mxu1 }
  0xe1   : > { %v476_v8 = vadd.f32 %v2447_v7, %v2429_v6  ;;  %v343_v9 = vpop.f32.mrf.mxu0 }
  0xe2   : > { %v467_v10 = vpop.f32.mrf.mxu1 }
  0xe3   : > { %v468_v11 = vadd.f32 %v467_v10, %v343_v9  ;;  %v2432_v12 = vpop.f32.mrf.mxu0 }
  0xe4   : > { %v2450_v13 = vpop.f32.mrf.mxu1 }
  0xe5   : > { %v489_v15 = vadd.f32 %v2450_v13, %v2432_v12  ;;  %v356_v16 = vpop.f32.mrf.mxu0 }
  0xe6   : > { %v480_v17 = vpop.f32.mrf.mxu1 }
  0xe7   : > { %v481_v18 = vadd.f32 %v480_v17, %v356_v16  ;;  %v2433_v19 = vpop.f32.mrf.mxu0 }
  0xe8   : > { %v2451_v20 = vpop.f32.mrf.mxu1 }
  0xe9   : > { %v492_v21 = vadd.f32 %v2451_v20, %v2433_v19  ;;  %v359_v22 = vpop.f32.mrf.mxu0 }
  0xea   : > { %v483_v25 = vpop.f32.mrf.mxu1 }
  0xeb   : > { %v484_v26 = vadd.f32 %v483_v25, %v359_v22  ;;  %v2436_v27 = vpop.f32.mrf.mxu0 }
  0xec   : > { %v2454_v28 = vpop.f32.mrf.mxu1 }
  0xed   : > { %v505_v29 = vadd.f32 %v2454_v28, %v2436_v27  ;;  %v372_v30 = vpop.f32.mrf.mxu0 }
  0xee   : > { %v496_v14 = vpop.f32.mrf.mxu1 }
  0xef   : > { %v497_v31 = vadd.f32 %v496_v14, %v372_v30  ;;  %v2437_v32 = vpop.f32.mrf.mxu0 }
  0xf0   : > { %v2455_v33 = vpop.f32.mrf.mxu1 }
  0xf1   : > { %v508_v34 = vadd.f32 %v2455_v33, %v2437_v32  ;;  %v375_v39 = vpop.f32.mrf.mxu0 }
  0xf2   : > { %v499_v40 = vpop.f32.mrf.mxu1 }
  0xf3   : > { %v500_v23 = vadd.f32 %v499_v40, %v375_v39  ;;  %v2460_v24 = vpop.f32.mrf.mxu0 }
  0xf4   : > { %v2986_v35 = vadd.f32 %v2460_v24, %v457_v51  ;;  %v2988_v36 = vpop.f32.mrf.mxu1 }
  0xf5   : > { %v598_v37 = vpop.f32.mrf.mxu0 }
  0xf6   : > { %v2990_v38 = vadd.f32 %v598_v37, %v449_v55  ;;  %v2992_v41 = vpop.f32.mrf.mxu1 }
  0xf7   : > { %v2461_v42 = vpop.f32.mrf.mxu0 }
  0xf8   : > { %v2994_v43 = vadd.f32 %v2461_v42, %v460_v58  ;;  %v2996_v44 = vpop.f32.mrf.mxu1 }
  0xf9   : > { %v601_v45 = vpop.f32.mrf.mxu0 }
  0xfa   : > { %v2998_v46 = vadd.f32 %v601_v45, %v452_v62  ;;  %v3000_v47 = vpop.f32.mrf.mxu1 }
  0xfb   : > { %v2464_v48 = vpop.f32.mrf.mxu0 }
  0xfc   : > { %v3002_v49 = vadd.f32 %v2464_v48, %v473_v1  ;;  %v3004_v50 = vpop.f32.mrf.mxu1 }
  0xfd   : > { %v614_v51 = vpop.f32.mrf.mxu0 }
  0xfe   : > { %v3006_v52 = vadd.f32 %v614_v51, %v465_v5  ;;  %v3008_v53 = vpop.f32.mrf.mxu1 }
  0xff   : > { %v2465_v54 = vpop.f32.mrf.mxu0 }
 0x100   : > { %v3010_v55 = vadd.f32 %v2465_v54, %v476_v8  ;;  %v3012_v56 = vpop.f32.mrf.mxu1 }
 0x101   : > { %v617_v57 = vpop.f32.mrf.mxu0 }
 0x102   : > { %v3014_v58 = vadd.f32 %v617_v57, %v468_v11  ;;  %v3016_v59 = vpop.f32.mrf.mxu1 }
 0x103   : > { %v2468_v60 = vpop.f32.mrf.mxu0 }
 0x104   : > { %v3018_v61 = vadd.f32 %v2468_v60, %v489_v15  ;;  %v3020_v62 = vpop.f32.mrf.mxu1 }
 0x105   : > { %v630_v63 = vpop.f32.mrf.mxu0 }
 0x106   : > { %v3022_v0 = vadd.f32 %v630_v63, %v481_v18  ;;  %v3024_v1 = vpop.f32.mrf.mxu1 }
 0x107   : > { %v2469_v2 = vpop.f32.mrf.mxu0 }
 0x108   : > { %v3026_v3 = vadd.f32 %v2469_v2, %v492_v21  ;;  %v3028_v4 = vpop.f32.mrf.mxu1 }
 0x109   : > { %v633_v5 = vpop.f32.mrf.mxu0 }
 0x10a   : > { %v3030_v6 = vadd.f32 %v633_v5, %v484_v26  ;;  %v3032_v7 = vpop.f32.mrf.mxu1 }
 0x10b   : > { %v2472_v8 = vpop.f32.mrf.mxu0 }
 0x10c   : > { %v3034_v9 = vadd.f32 %v2472_v8, %v505_v29  ;;  %v3036_v10 = vpop.f32.mrf.mxu1 }
 0x10d   : > { %v646_v11 = vpop.f32.mrf.mxu0 }
 0x10e   : > { %v3038_v12 = vadd.f32 %v646_v11, %v497_v31  ;;  %v3040_v13 = vpop.f32.mrf.mxu1 }
 0x10f   : > { %3250 = vst [vmem:[#allocation2_spill] sm:$0xff] %v3040_v13  ;;  %v2473_v15 = vpop.f32.mrf.mxu0 }
 0x110   : > { %v3042_v16 = vadd.f32 %v2473_v15, %v508_v34  ;;  %v3044_v17 = vpop.f32.mrf.mxu1 }
 0x111   : > { %3252 = vst [vmem:[#allocation4_spill] sm:$0xff] %v3044_v17  ;;  %v649_v18 = vpop.f32.mrf.mxu0 }
 0x112   : > { %3251 = vst [vmem:[#allocation3_spill] sm:$0xff] %v3042_v16  ;;  %v3046_v19 = vadd.f32 %v649_v18, %v500_v23  ;;  %v3048_v20 = vpop.f32.mrf.mxu1 }
 0x113   : > { %3254 = vst [vmem:[#allocation6_spill] sm:$0xff] %v3048_v20  ;;  %v2496_v21 = vpop.f32.mrf.mxu0 }
 0x114   : > { %3253 = vst [vmem:[#allocation5_spill] sm:$0xff] %v3046_v19  ;;  %v2514_v22 = vpop.f32.mrf.mxu1 }
 0x115   : > { %v933_v25 = vpop.f32.mrf.mxu0 }
 0x116   : > { %v1099_v26 = vpop.f32.mrf.mxu1 }
 0x117   : > { %v2497_v27 = vpop.f32.mrf.mxu0 }
 0x118   : > { %v3050_v28 = vpop.f32.mrf.mxu1 }
 0x119   : > { %v936_v29 = vpop.f32.mrf.mxu0 }
 0x11a   : > { %v3052_v30 = vpop.f32.mrf.mxu1 }
 0x11b   : > { %v2500_v14 = vpop.f32.mrf.mxu0 }
 0x11c   : > { %v3054_v31 = vpop.f32.mrf.mxu1 }
 0x11d   : > { %v949_v32 = vpop.f32.mrf.mxu0 }
 0x11e   : > { %v3056_v33 = vpop.f32.mrf.mxu1 }
 0x11f   : > { %v3058_v34 = vpop.f32.mrf.mxu0 }
 0x120   : > { %v3060_v39 = vpop.f32.mrf.mxu1 }
 0x121   : > { %v3062_v40 = vpop.f32.mrf.mxu0 }
 0x122   : > { %v3064_v23 = vpop.f32.mrf.mxu1 }
 0x123   : > { %3255 = vst [vmem:[#allocation7_spill] sm:$0xff] %v3064_v23  ;;  %v3066_v24 = vpop.f32.mrf.mxu0 }
 0x124   : > { %v3068_v37 = vpop.f32.mrf.mxu1 }
 0x125   : > { %3256 = vst [vmem:[#allocation8_spill] sm:$0xff] %v3068_v37  ;;  %v3070_v42 = vpop.f32.mrf.mxu0 }
 0x126   : > { %3257 = vst [vmem:[#allocation9_spill] sm:$0xff] %v3070_v42  ;;  %v3072_v45 = vpop.f32.mrf.mxu1  ;;  %v830_v42 = vadd.f32 %v2992_v41, %v2990_v38  ;;  %v836_v38 = vadd.f32 %v3004_v50, %v3002_v49 }
 0x127   : > { %3258 = vst [vmem:[#allocation10_spill] sm:$0xff] %v3072_v45  ;;  %v3074_v48 = vpop.f32.mrf.mxu0 }
 0x128   : > { %3259 = vst [vmem:[#allocation11_spill] sm:$0xff] %v3074_v48  ;;  %v3076_v51 = vpop.f32.mrf.mxu1  ;;  %v832_v48 = vadd.f32 %v2988_v36, %v2986_v35 }
 0x129   : > { %3260 = vst [vmem:[#allocation12_spill] sm:$0xff] %v3076_v51  ;;  %v3078_v54 = vpop.f32.mrf.mxu0 }
 0x12a   : > { %3261 = vst [vmem:[#allocation13_spill] sm:$0xff] %v3078_v54  ;;  %v3080_v57 = vpop.f32.mrf.mxu1  ;;  %v998_v23 = vadd.f32 %v2496_v21, %v832_v48 }
 0x12b   : > { %3262 = vst [vmem:[#allocation14_spill] sm:$0xff] %v3080_v57  ;;  %v3082_v60 = vpop.f32.mrf.mxu0 }
 0x12c   : > { %3263 = vst [vmem:[#allocation15_spill] sm:$0xff] %v3082_v60  ;;  %v3084_v63 = vpop.f32.mrf.mxu1  ;;  %v1164_v35 = vadd.f32 %v2514_v22, %v998_v23  ;;  %v837_v22 = vadd.f32 %v3012_v56, %v3010_v55  ;;  %v840_v56 = vadd.f32 %v3020_v62, %v3018_v61 }
 0x12d   : > { %3264 = vst [vmem:[#allocation16_spill] sm:$0xff] %v3084_v63  ;;  %v3086_v2 = vpop.f32.mrf.mxu0 }
 0x12e   : > { %3265 = vst [vmem:[#allocation17_spill] sm:$0xff] %v3086_v2  ;;  %v3088_v5 = vpop.f32.mrf.mxu1 }
 0x12f   : > { %3266 = vst [vmem:[#allocation18_spill] sm:$0xff] %v3088_v5  ;;  %v3090_v8 = vpop.f32.mrf.mxu0 }
 0x130   : > { %3267 = vst [vmem:[#allocation19_spill] sm:$0xff] %v3090_v8  ;;  %v3092_v11 = vpop.f32.mrf.mxu1 }
 0x131   : > { %3268 = vst [vmem:[#allocation20_spill] sm:$0xff] %v3092_v11  ;;  %v3094_v15 = vpop.f32.mrf.mxu0 }
 0x132   : > { %3269 = vst [vmem:[#allocation21_spill] sm:$0xff] %v3094_v15  ;;  %v3096_v18 = vpop.f32.mrf.mxu1 }
 0x133   : > { %3270 = vst [vmem:[#allocation22_spill] sm:$0xff] %v3096_v18  ;;  %v2532_v20 = vpop.f32.mrf.mxu0 }
 0x134   : > { %v2550_v19 = vpop.f32.mrf.mxu1  ;;  %v1333_v48 = vadd.f32 %v2532_v20, %v1164_v35 }
 0x135   : > { %v1268_v51 = vpop.f32.mrf.mxu0 }
 0x136   : > { %v1434_v57 = vpop.f32.mrf.mxu1  ;;  %v1499_v50 = vadd.f32 %v2550_v19, %v1333_v48 }
 0x137   : > { %v2533_v17 = vpop.f32.mrf.mxu0 }
 0x138   : > { %v2551_v16 = vpop.f32.mrf.mxu1 }
 0x139   : > { %v1271_v60 = vpop.f32.mrf.mxu0 }
 0x13a   : > { %v1437_v54 = vpop.f32.mrf.mxu1 }
 0x13b   : > { %v2536_v63 = vpop.f32.mrf.mxu0 }
 0x13c   : > { %v3100_v5 = vpop.f32.mrf.mxu1 }
 0x13d   : > { %v1284_v2 = vpop.f32.mrf.mxu0  ;;  %3272 = vst [vmem:[#allocation24_spill] sm:$0xff] %v3100_v5 }
 0x13e   : > { %v3106_v15 = vpop.f32.mrf.mxu1 }
 0x13f   : > { %v3098_v45 = vpop.f32.mrf.mxu0  ;;  %3275 = vst [vmem:[#allocation27_spill] sm:$0xff] %v3106_v15 }
 0x140   : > { %3271 = vst [vmem:[#allocation23_spill] sm:$0xff] %v3098_v45  ;;  %v3116_v45 = vpop.f32.mrf.mxu1 }
 0x141   : > { %v3102_v8 = vpop.f32.mrf.mxu0 }
 0x142   : > { %3273 = vst [vmem:[#allocation25_spill] sm:$0xff] %v3102_v8  ;;  %v996_v8 = vadd.f32 %v933_v25, %v830_v42 }
 0x143   : > { %v3104_v11 = vpop.f32.mrf.mxu0 }
 0x144   : > { %3274 = vst [vmem:[#allocation26_spill] sm:$0xff] %v3104_v11  ;;  %v833_v11 = vadd.f32 %v2996_v44, %v2994_v43  ;;  %v1162_v41 = vadd.f32 %v1099_v26, %v996_v8  ;;  %v834_v43 = vadd.f32 %v3008_v53, %v3006_v52  ;;  %v835_v52 = vadd.f32 %v3016_v59, %v3014_v58  ;;  %v3159_v58 = vld [vmem:[%s3246_s2] ss:$0 sm:$0xff] }
 0x145   : > { %v3108_v18 = vpop.f32.mrf.mxu0  ;;  %v1003_v53 = vadd.f32 %v3058_v34, %v837_v22 }
 0x146   : > { %3276 = vst [vmem:[#allocation28_spill] sm:$0xff] %v3108_v18  ;;  %v831_v18 = vadd.f32 %v3000_v47, %v2998_v46  ;;  %v999_v36 = vadd.f32 %v2497_v27, %v833_v11  ;;  %v1002_v46 = vadd.f32 %v2500_v14, %v836_v38  ;;  %v1331_v47 = vadd.f32 %v1268_v51, %v1162_v41 }
 0x147   : > { %v3112_v37 = vpop.f32.mrf.mxu0  ;;  %v1000_v27 = vadd.f32 %v949_v32, %v834_v43  ;;  %v838_v32 = vadd.f32 %v3024_v1, %v3022_v0  ;;  %v839_v0 = vadd.f32 %v3032_v7, %v3030_v6  ;;  %v1169_v1 = vadd.f32 %v3060_v39, %v1003_v53  ;;  %v3281_v7 = vld [vmem:[#allocation23_spill] sm:$0xff]  ;;  %v3288_v53 = vld [vmem:[#allocation13_spill] sm:$0xff] }
 0x148   : > { %3277 = vst [vmem:[#allocation29_spill] sm:$0xff] %v3112_v37  ;;  %v3126_v37 = vpop.f32.mrf.mxu1  ;;  %v997_v21 = vadd.f32 %v936_v29, %v831_v18  ;;  %v1165_v25 = vadd.f32 %v3050_v28, %v999_v36  ;;  %v1168_v28 = vadd.f32 %v3054_v31, %v1002_v46  ;;  %v1497_v29 = vadd.f32 %v1434_v57, %v1331_v47  ;;  %v3280_v18 = vld [vmem:[#allocation9_spill] sm:$0xff] }
 0x149   : > { %v3118_v5 = vpop.f32.mrf.mxu0  ;;  %v1166_v19 = vadd.f32 %v3056_v33, %v1000_v27  ;;  %v841_v31 = vadd.f32 %v3028_v4, %v3026_v3  ;;  %v1006_v33 = vadd.f32 %v3066_v24, %v840_v56  ;;  %v844_v57 = vadd.f32 %v3036_v10, %v3034_v9  ;;  %v3278_v3 = vld [vmem:[#allocation2_spill] sm:$0xff] }
 0x14a   : > { %v3139_v23 = vpop.f32.mrf.mxu1  ;;  %v1163_v49 = vadd.f32 %v3052_v30, %v997_v21  ;;  %v1334_v20 = vadd.f32 %v2533_v17, %v1165_v25  ;;  %v1001_v17 = vadd.f32 %v3062_v40, %v835_v52  ;;  %v1337_v61 = vadd.f32 %v2536_v63, %v1168_v28  ;;  %v3284_v21 = vld [vmem:[#allocation11_spill] sm:$0xff]  ;;  %v3286_v25 = vld [vmem:[#allocation25_spill] sm:$0xff] }
 0x14b   : > { %v3122_v15 = vpop.f32.mrf.mxu0  ;;  %v1335_v40 = vadd.f32 %v1284_v2, %v1166_v19  ;;  %v842_v4 = vadd.f32 %v3278_v3, %v3038_v12  ;;  %v1004_v6 = vadd.f32 %v3280_v18, %v838_v32  ;;  %v1338_v39 = vadd.f32 %v3281_v7, %v1169_v1  ;;  %v3282_v2 = vld [vmem:[#allocation24_spill] sm:$0xff]  ;;  %v3285_v12 = vld [vmem:[#allocation27_spill] sm:$0xff] }
 0x14c   : > { %v1332_v14 = vadd.f32 %v1271_v60, %v1163_v49  ;;  %v3154_v30 = vpop.f32.mrf.mxu1  ;;  %v1500_v34 = vadd.f32 %v2551_v16, %v1334_v20  ;;  %v3279_v16 = vld [vmem:[#allocation7_spill] sm:$0xff]  ;;  %v1503_v36 = vadd.f32 %v3282_v2, %v1337_v61  ;;  %v1007_v48 = vadd.f32 %v3284_v21, %v841_v31  ;;  %v3287_v20 = vld [vmem:[#allocation10_spill] sm:$0xff] }
 0x14d   : > { %v3128_v13 = vpop.f32.mrf.mxu0  ;;  %v1167_v63 = vadd.f32 %v3279_v16, %v1001_v17  ;;  %v1501_v43 = vadd.f32 %v3285_v12, %v1335_v40  ;;  %v1170_v52 = vadd.f32 %v3287_v20, %v1004_v6  ;;  %v1504_v28 = vadd.f32 %v3116_v45, %v1338_v39  ;;  %v3290_v31 = vld [vmem:[#allocation3_spill] sm:$0xff]  ;;  %v3295_v16 = vld [vmem:[#allocation5_spill] sm:$0xff]  ;;  %v3297_v6 = vld [vmem:[#allocation14_spill] sm:$0xff] }
 0x14e   : > { %v1498_v60 = vadd.f32 %v1437_v54, %v1332_v14  ;;  %v2559_v35 = vpop.f32.mrf.mxu1  ;;  %v3283_v54 = vld [vmem:[#allocation8_spill] sm:$0xff]  ;;  %v3298_v39 = vld [vmem:[#allocation17_spill] sm:$0xff] }
 0x14f   : > { %v3134_v44 = vpop.f32.mrf.mxu0  ;;  %v1172_v41 = vadd.f32 %v3283_v54, %v1006_v33  ;;  %v1336_v46 = vadd.f32 %v3286_v25, %v1167_v63  ;;  %v3293_v33 = vld [vmem:[#allocation15_spill] sm:$0xff]  ;;  %v3296_v63 = vld [vmem:[#allocation6_spill] sm:$0xff]  ;;  %v3299_v2 = vld [vmem:[#allocation29_spill] sm:$0xff] }
 0x150   : > { %v1010_v40 = vadd.f32 %v3293_v33, %v844_v57  ;;  %v843_v18 = vadd.f32 %v3296_v63, %v3295_v16 }
 0x151   : > { %v3141_v42 = vpop.f32.mrf.mxu0  ;;  %v1502_v45 = vadd.f32 %v3126_v37, %v1336_v46 }
 0x153   : > { %v2568_v26 = vpop.f32.mrf.mxu0 }
 0x154   : > { %v1665_v55 = vadd.f32 %v2568_v26, %v1499_v50  ;;  %v1005_v26 = vadd.f32 %v3288_v53, %v839_v0 }
 0x155   : > { %v1600_v59 = vpop.f32.mrf.mxu0 }
 0x156   : > { %v1663_v62 = vadd.f32 %v1600_v59, %v1497_v29  ;;  %v1688_v8 = vadd.f32 %v3159_v58, %v1665_v55  ;;  %v3289_v29 = vld [vmem:[#allocation26_spill] sm:$0xff]  ;;  %v1469_v55 = vpop.f32.mrf.mxu1  ;;  %v1171_v7 = vadd.f32 %v3297_v6, %v1005_v26 }
 0x157   : > { %v2569_v51 = vpop.f32.mrf.mxu0  ;;  %v1341_v14 = vadd.f32 %v3289_v29, %v1172_v41  ;;  %v3300_v41 = vld [vmem:[#allocation16_spill] sm:$0xff] }
 0x158   : > { %v1666_v11 = vadd.f32 %v2569_v51, %v1500_v34  ;;  %v1686_v38 = vadd.f32 %v3159_v58, %v1663_v62  ;;  %v1704_v22 = vmax.f32 %v1688_v8, 0.0  ;;  %v3291_v34 = vld [vmem:[#allocation4_spill] sm:$0xff]  ;;  %v1176_v21 = vadd.f32 %v3300_v41, %v1010_v40 }
 0x159   : > { %v1603_v24 = vpop.f32.mrf.mxu0  ;;  %v845_v61 = vadd.f32 %v3291_v34, %v3290_v31  ;;  %v3292_v62 = vld [vmem:[#allocation12_spill] sm:$0xff] }
 0x15a   : > { %v1689_v9 = vadd.f32 %v3159_v58, %v1666_v11  ;;  %v1664_v10 = vadd.f32 %v1603_v24, %v1498_v60  ;;  %v1702_v32 = vmax.f32 %v1686_v38, 0.0  ;;  %v1173_v1 = vadd.f32 %v3292_v62, %v1007_v48  ;;  %v3294_v51 = vld [vmem:[#allocation28_spill] sm:$0xff]  ;;  %v2562_v38 = vpop.f32.mrf.mxu1  ;;  %v3301_v48 = vld [vmem:[#allocation19_spill] sm:$0xff]  ;;  %v3305_v62 = vld [vmem:[#allocation22_spill] sm:$0xff] }
 0x15b   : > { %v2572_v47 = vpop.f32.mrf.mxu0  ;;  %v1339_v60 = vadd.f32 %v3294_v51, %v1170_v52  ;;  %v1008_v24 = vadd.f32 %v3298_v39, %v842_v4  ;;  %v1011_v12 = vadd.f32 %v3301_v48, %v845_v61  ;;  %v1340_v4 = vadd.f32 %v3118_v5, %v1171_v7 }
 0x15c   : > { %v1705_v27 = vmax.f32 %v1689_v9, 0.0  ;;  %v1687_v49 = vadd.f32 %v3159_v58, %v1664_v10  ;;  %v1669_v50 = vadd.f32 %v2572_v47, %v1503_v36  ;;  %v1342_v36 = vadd.f32 %v3299_v2, %v1173_v1  ;;  %v1482_v26 = vpop.f32.mrf.mxu1 }
 0x15d   : > { %v1616_v56 = vpop.f32.mrf.mxu0  ;;  %v1507_v9 = vadd.f32 %v3139_v23, %v1341_v14  ;;  %v1345_v53 = vadd.f32 %v3122_v15, %v1176_v21 }
 0x15e   : > { %v1719_v19 = vpack.c.bf16 %v1705_v27, %v1704_v22  ;;  %v1703_v17 = vmax.f32 %v1687_v49, 0.0  ;;  %v1667_v59 = vadd.f32 %v1616_v56, %v1501_v43  ;;  %v1692_v8 = vadd.f32 %v3159_v58, %v1669_v50  ;;  %v3302_v27 = vld [vmem:[#allocation18_spill] sm:$0xff]  ;;  %v3303_v50 = vld [vmem:[#allocation21_spill] sm:$0xff]  ;;  %v3304_v56 = vld [vmem:[#allocation20_spill] sm:$0xff]  ;;  %v2563_v1 = vpop.f32.mrf.mxu1 }
 0x15f   : > { %v2573_v0 = vpop.f32.mrf.mxu0  ;;  %v1505_v43 = vadd.f32 %v3154_v30, %v1339_v60  ;;  %v1174_v49 = vadd.f32 %v3302_v27, %v1008_v24  ;;  %v1009_v20 = vadd.f32 %v3303_v50, %v843_v18  ;;  %v1508_v52 = vadd.f32 %v2559_v35, %v1342_v36 }
 0x160   : > { %v1670_v11 = vadd.f32 %v2573_v0, %v1504_v28  ;;  %v1718_v3 = vpack.c.bf16 %v1703_v17, %v1702_v32  ;;  %v1690_v10 = vadd.f32 %v3159_v58, %v1667_v59  ;;  %v1708_v46 = vmax.f32 %v1692_v8, 0.0  ;;  %v1485_v63 = vpop.f32.mrf.mxu1 }
 0x161   : > { %v1619_v57 = vpop.f32.mrf.mxu0  ;;  %v1177_v32 = vadd.f32 %v3304_v56, %v1011_v12  ;;  %v1506_v59 = vadd.f32 %v1469_v55, %v1340_v4  ;;  %v1175_v35 = vadd.f32 %v3305_v62, %v1009_v20  ;;  %v1511_v40 = vadd.f32 %v2562_v38, %v1345_v53 }
 0x162   : > { %v1693_v37 = vadd.f32 %v3159_v58, %v1670_v11  ;;  %v1668_v54 = vadd.f32 %v1619_v57, %v1502_v45  ;;  %2598 = vmatprep.mubr.bf16.mxu1 %v1718_v3  ;;  %v1706_v29 = vmax.f32 %v1690_v10, 0.0 }
 0x163   : > { %v2576_v25 = vpop.f32.mrf.mxu0  ;;  %2599 = vmatmul.mubr.bf16.vlgmr.msra.gmra.mxu1 %v1719_v19  ;;  %v1343_v19 = vadd.f32 %v3128_v13, %v1174_v49  ;;  %v1346_v15 = vadd.f32 %v3134_v44, %v1177_v32  ;;  %v1344_v55 = vadd.f32 %v3141_v42, %v1175_v35 }
 0x164   : > { %v1709_v47 = vmax.f32 %v1693_v37, 0.0  ;;  %v1691_v23 = vadd.f32 %v3159_v58, %v1668_v54  ;;  %v1673_v22 = vadd.f32 %v2576_v25, %v1507_v9 }
 0x165   : > { %v1632_v28 = vpop.f32.mrf.mxu0  ;;  %v1509_v13 = vadd.f32 %v1482_v26, %v1343_v19  ;;  %v1512_v44 = vadd.f32 %v2563_v1, %v1346_v15  ;;  %v1510_v36 = vadd.f32 %v1485_v63, %v1344_v55 }
 0x166   : > { %v1707_v30 = vmax.f32 %v1691_v23, 0.0  ;;  %v1671_v14 = vadd.f32 %v1632_v28, %v1505_v43  ;;  %v1721_v5 = vpack.c.bf16 %v1709_v47, %v1708_v46  ;;  %v1696_v31 = vadd.f32 %v3159_v58, %v1673_v22  ;;  %v2233_v47 = vld [vmem:[%s3248_s4] ss:$0 sm:$0xff] }
 0x167   : > { %v2577_v17 = vpop.f32.mrf.mxu0 }
 0x168   : > { %v1674_v34 = vadd.f32 %v2577_v17, %v1508_v52  ;;  %v1720_v61 = vpack.c.bf16 %v1707_v30, %v1706_v29  ;;  %v1694_v51 = vadd.f32 %v3159_v58, %v1671_v14  ;;  %v1712_v8 = vmax.f32 %v1696_v31, 0.0 }
 0x169   : > { %v1635_v33 = vpop.f32.mrf.mxu0 }
 0x16a   : > { %v1697_v60 = vadd.f32 %v3159_v58, %v1674_v34  ;;  %v1672_v0 = vadd.f32 %v1635_v33, %v1506_v59  ;;  %2602 = vmatprep.mubr.bf16.mxu1 %v1720_v61  ;;  %v1710_v6 = vmax.f32 %v1694_v51, 0.0 }
 0x16b   : > { %v2580_v45 = vpop.f32.mrf.mxu0  ;;  %2603 = vmatmul.mubr.bf16.gmra.mxu1 %v1721_v5 }
 0x16c   : > { %v1713_v11 = vmax.f32 %v1697_v60, 0.0  ;;  %v1695_v3 = vadd.f32 %v3159_v58, %v1672_v0  ;;  %v1677_v16 = vadd.f32 %v2580_v45, %v1511_v40 }
 0x16d   : > { %v1648_v18 = vpop.f32.mrf.mxu0 }
 0x16e   : > { %v1711_v7 = vmax.f32 %v1695_v3, 0.0  ;;  %v1675_v39 = vadd.f32 %v1648_v18, %v1509_v13  ;;  %v1723_v24 = vpack.c.bf16 %v1713_v11, %v1712_v8  ;;  %v1700_v38 = vadd.f32 %v3159_v58, %v1677_v16 }
 0x16f   : > { %v2581_v2 = vpop.f32.mrf.mxu0 }
 0x170   : > { %v1678_v57 = vadd.f32 %v2581_v2, %v1512_v44  ;;  %v1722_v42 = vpack.c.bf16 %v1711_v7, %v1710_v6  ;;  %v1698_v10 = vadd.f32 %v3159_v58, %v1675_v39  ;;  %v1716_v41 = vmax.f32 %v1700_v38, 0.0 }
 0x171   : > { %v1651_v9 = vpop.f32.mrf.mxu0 }
 0x172   : > { %v1701_v37 = vadd.f32 %v3159_v58, %v1678_v57  ;;  %v1676_v54 = vadd.f32 %v1651_v9, %v1510_v36  ;;  %2606 = vmatprep.mubr.bf16.mxu1 %v1722_v42  ;;  %v1714_v12 = vmax.f32 %v1698_v10, 0.0 }
 0x173   : > { %2607 = vmatmul.mubr.bf16.gmra.mxu1 %v1723_v24 }
 0x174   : > { %v1717_v21 = vmax.f32 %v1701_v37, 0.0  ;;  %v1699_v48 = vadd.f32 %v3159_v58, %v1676_v54 }
 0x176   : > { %v1715_v43 = vmax.f32 %v1699_v48, 0.0  ;;  %v1725_v4 = vpack.c.bf16 %v1717_v21, %v1716_v41 }
 0x178   : > { %v1724_v25 = vpack.c.bf16 %v1715_v43, %v1714_v12 }
 0x17a   : > { %2610 = vmatprep.mubr.bf16.mxu1 %v1724_v25 }
 0x17b   : > { %2611 = vmatmul.mubr.bf16.gmra.mxu1 %v1725_v4 }
 0x223   : > { %v2600_v46 = vpop.f32.mrf.mxu1 }
 0x224   : > { %v1840_v22 = vadd.f32 %v2600_v46, %v2233_v47 }
 0x225   : > { %v1831_v23 = vpop.f32.mrf.mxu1 }
 0x226   : > { %v1832_v49 = vadd.f32 %v2233_v47, %v1831_v23  ;;  %v1896_v20 = vmax.f32 %v1840_v22, 0.0 }
 0x227   : > { %v2601_v27 = vpop.f32.mrf.mxu1 }
 0x228   : > { %v1843_v58 = vadd.f32 %v2601_v27, %v2233_v47  ;;  %v1894_v28 = vmax.f32 %v1832_v49, 0.0 }
 0x229   : > { %v1834_v50 = vpop.f32.mrf.mxu1 }
 0x22a   : > { %v1897_v52 = vmax.f32 %v1843_v58, 0.0  ;;  %v1835_v53 = vadd.f32 %v2233_v47, %v1834_v50 }
 0x22b   : > { %v2604_v26 = vpop.f32.mrf.mxu1 }
 0x22c   : > { %v2284_v29 = vpack.c.bf16 %v1897_v52, %v1896_v20  ;;  %v1895_v30 = vmax.f32 %v1835_v53, 0.0  ;;  %v1856_v56 = vadd.f32 %v2604_v26, %v2233_v47 }
 0x22d   : > { %v1847_v14 = vpop.f32.mrf.mxu1 }
 0x22e   : > { %2316 = vst [vmem:[%s3231_s19 + $0x8] sm:$0xff] %v2284_v29   ;;  %v2279_v5 = vpack.c.bf16 %v1895_v30, %v1894_v28  ;;  %v1848_v19 = vadd.f32 %v2233_v47, %v1847_v14  ;;  %v1900_v31 = vmax.f32 %v1856_v56, 0.0 }
 0x22f   : > { %v2605_v32 = vpop.f32.mrf.mxu1 }
 0x230   : > { %2280 = vst [vmem:[%s3231_s19] sm:$0xff] %v2279_v5   ;;  %v1859_v17 = vadd.f32 %v2605_v32, %v2233_v47  ;;  %v1898_v35 = vmax.f32 %v1848_v19, 0.0 }
 0x231   : > { %v1850_v59 = vpop.f32.mrf.mxu1 }
 0x232   : > { %v1901_v34 = vmax.f32 %v1859_v17, 0.0  ;;  %v1851_v61 = vadd.f32 %v2233_v47, %v1850_v59 }
 0x233   : > { %v2608_v62 = vpop.f32.mrf.mxu1 }
 0x234   : > { %v2294_v15 = vpack.c.bf16 %v1901_v34, %v1900_v31  ;;  %v1899_v1 = vmax.f32 %v1851_v61, 0.0  ;;  %v1872_v51 = vadd.f32 %v2608_v62, %v2233_v47 }
 0x235   : > { %v1863_v33 = vpop.f32.mrf.mxu1 }
 0x236   : > { %2318 = vst [vmem:[%s3231_s19 + $0x18] sm:$0xff] %v2294_v15   ;;  %v2289_v40 = vpack.c.bf16 %v1899_v1, %v1898_v35  ;;  %v1864_v0 = vadd.f32 %v2233_v47, %v1863_v33  ;;  %v1904_v45 = vmax.f32 %v1872_v51, 0.0 }
 0x237   : > { %v2609_v60 = vpop.f32.mrf.mxu1 }
 0x238   : > { %2317 = vst [vmem:[%s3231_s19 + $0x10] sm:$0xff] %v2289_v40   ;;  %v1875_v13 = vadd.f32 %v2609_v60, %v2233_v47  ;;  %v1902_v16 = vmax.f32 %v1864_v0, 0.0 }
 0x239   : > { %v1866_v55 = vpop.f32.mrf.mxu1 }
 0x23a   : > { %v1905_v8 = vmax.f32 %v1875_v13, 0.0  ;;  %v1867_v11 = vadd.f32 %v2233_v47, %v1866_v55 }
 0x23b   : > { %v2612_v3 = vpop.f32.mrf.mxu1 }
 0x23c   : > { %v2304_v44 = vpack.c.bf16 %v1905_v8, %v1904_v45  ;;  %v1903_v63 = vmax.f32 %v1867_v11, 0.0  ;;  %v1888_v7 = vadd.f32 %v2612_v3, %v2233_v47 }
 0x23d   : > { %v1879_v18 = vpop.f32.mrf.mxu1 }
 0x23e   : > { %2320 = vst [vmem:[%s3231_s19 + $0x28] sm:$0xff] %v2304_v44   ;;  %v2299_v6 = vpack.c.bf16 %v1903_v63, %v1902_v16  ;;  %v1880_v24 = vadd.f32 %v2233_v47, %v1879_v18  ;;  %v1908_v38 = vmax.f32 %v1888_v7, 0.0 }
 0x23f   : > { %v2613_v39 = vpop.f32.mrf.mxu1 }
 0x240   : > { %2319 = vst [vmem:[%s3231_s19 + $0x20] sm:$0xff] %v2299_v6   ;;  %v1891_v2 = vadd.f32 %v2613_v39, %v2233_v47  ;;  %v1906_v9 = vmax.f32 %v1880_v24, 0.0 }
 0x241   : > { %v1882_v36 = vpop.f32.mrf.mxu1 }
 0x242   : > { %v1909_v57 = vmax.f32 %v1891_v2, 0.0  ;;  %v1883_v42 = vadd.f32 %v2233_v47, %v1882_v36 }
 0x244   : > { %v2314_v10 = vpack.c.bf16 %v1909_v57, %v1908_v38  ;;  %v1907_v37 = vmax.f32 %v1883_v42, 0.0 }
 0x246   : > { %2322 = vst [vmem:[%s3231_s19 + $0x38] sm:$0xff] %v2314_v10   ;;  %v2309_v54 = vpack.c.bf16 %v1907_v37, %v1906_v9 }
 0x248   : > { %2321 = vst [vmem:[%s3231_s19 + $0x30] sm:$0xff] %v2309_v54  }
 0x249 PF: > { %s15_s18 = sadd.s32 1, %s2645_s18  }
 0x24a   : > { %p12_p4 = scmp.ge.s32.totalorder %s15_s18, 4  }
 0x24c   :  { %14 = sbr.rel (!%p12_p4) target bundleno = 1 (0x1), region = 78 }

</bundles_post_ra>
